<compile_context>
chip_gen: v5e
topology: v5e:2x2
jax: 0.10.0
libtpu: 0.0.40
codegen_flags: <defaults>
</compile_context>

<pallas_src>
import functools

import numpy as np
import jax
import jax.numpy as jnp
from jax import lax
from jax.experimental import pallas as pl
from jax.experimental.pallas import tpu as pltpu


# ----------------------------------------------------------------------------
# Host-side parameter construction (mirrors MatrixKANLayer.__init__ shapes)
# ----------------------------------------------------------------------------
def calculate_basis_matrix(k: int) -> np.ndarray:
    """Uniform B-spline basis matrix, identical recursion to the PyTorch module."""
    bm = np.array([[1.0]], dtype=np.float64)
    scalar = 1.0
    kk = 2
    while kk <= k + 1:
        term_1 = np.pad(bm, ((0, 1), (0, 0)))      # pad one row at bottom
        term_3 = np.pad(bm, ((1, 0), (0, 0)))      # pad one row at top
        term_2 = np.zeros((kk - 1, kk), dtype=np.float64)
        term_4 = np.zeros((kk - 1, kk), dtype=np.float64)
        for i in range(kk - 1):
            term_2[i, i] = i + 1
            term_2[i, i + 1] = kk - (i + 2)
            term_4[i, i] = -1.0
            term_4[i, i + 1] = 1.0
        bm = term_1 @ term_2 + term_3 @ term_4
        scalar *= 1.0 / (kk - 1)
        kk += 1
    return bm * scalar


def make_extended_grid(in_dim, num, k, grid_range=(-1.0, 1.0)) -> np.ndarray:
    base = np.linspace(grid_range[0], grid_range[1], num + 1)
    h = (grid_range[1] - grid_range[0]) / num
    ext = np.concatenate(
        [base[0] - h * np.arange(k, 0, -1), base, base[-1] + h * np.arange(1, k + 1)]
    )
    return np.broadcast_to(ext, (in_dim, ext.shape[0])).astype(np.float32)


def _round_up(x, m):
    return ((x + m - 1) // m) * m


# ----------------------------------------------------------------------------
# Pallas kernel (batch on the lane dimension)
# ----------------------------------------------------------------------------
def matrixkan_kernel(*refs, k, num, in_dim, out_dim, G, bm,
                     need_postacts, need_postspline, matmul_dtype):
    I = in_dim
    L = out_dim
    J = num + k                    # number of B-spline basis functions
    K1 = k + 1
    need_extras = need_postacts or need_postspline

    it = iter(refs)
    xT_ref = next(it)              # (I, TB)   batch on lanes
    gp_ref = next(it)              # (I, 3)    [g0, g_last, inv_h]
    if need_extras:
        coef_ref = next(it)        # (I, L, J)
        sbm_ref = next(it)         # (I, L, 1)  mask*scale_base
        spm_ref = next(it)         # (I, L, 1)  mask*scale_sp
    else:
        wy_ref = next(it)          # (L, I*J)   mask*scale_sp folded into coef
        wb_ref = next(it)          # (L, I)     mask*scale_base
    y_ref = next(it)               # (L, TB)
    postacts_ref = next(it) if need_postacts else None
    postspline_ref = next(it) if need_postspline else None

    TB = xT_ref.shape[1]
    xT = xT_ref[...]
    gp = gp_ref[...]
    g0 = gp[:, 0:1]
    g_last = gp[:, 1:2]
    inv_h = gp[:, 2:3]

    # --- arithmetic interval lookup on the uniform extended grid -------------
    # TODO(synk): assumes a uniform grid step (same assumption as the module's
    # power_bases via grid_intervals); non-uniform grids after a grid update
    # would need the comparison-based search.
    s = (xT - g0) * inv_h                                            # (I, TB)
    t_f = jnp.clip(jnp.floor(s), 0.0, float(G - 2))
    t_i = t_f.astype(jnp.int32)
    u1 = s - t_f                                                     # (I, TB)
    rng = jnp.logical_and(xT >= g0, xT < g_last).astype(jnp.float32)

    # --- power bases x basis matrix (bm is a baked-in compile-time constant) -
    vs = [jnp.zeros_like(u1) for _ in range(K1)]
    u_pow = jnp.ones_like(u1)
    for c in range(K1):
        for cp in range(K1):
            coeff = bm[c][cp]
            if coeff != 0.0:
                vs[cp] = vs[cp] + coeff * u_pow
        if c + 1 < K1:
            u_pow = u_pow * u1
    vs = [v * rng for v in vs]     # fold the out-of-range mask in once

    # --- disjoint select-scatter of local values into the (I, J, TB) basis ---
    j3 = lax.broadcasted_iota(jnp.int32, (I, J, TB), 1)
    t3 = t_i[:, None, :]
    basis3 = jnp.zeros((I, J, TB), jnp.float32)
    for cp in range(K1):
        # target basis indices are disjoint across cp -> select, not add
        basis3 = jnp.where(j3 == t3 + (cp - k), vs[cp][:, None, :], basis3)

    # --- residual (SiLU) path -------------------------------------------------
    base_T = xT * jax.nn.sigmoid(xT)                                 # (I, TB)

    md = matmul_dtype
    if need_extras:
        # per-input-dim batched contraction (linear in in_dim, no zero blocks):
        #   ps3[i, l, b] = sum_j coef[i, l, j] * basis3[i, j, b]
        ps3 = lax.dot_general(
            coef_ref[...].astype(md), basis3.astype(md),
            dimension_numbers=(((2,), (1,)), ((0,), (0,))),
            preferred_element_type=jnp.float32)                      # (I, L, TB)
        postacts3 = spm_ref[...] * ps3 + sbm_ref[...] * base_T[:, None, :]
        if need_postspline:
            postspline_ref[...] = ps3
        if need_postacts:
            postacts_ref[...] = postacts3
        # reduce over the *leading* in_dim axis (no sublane sub-slicing)
        y_ref[...] = jnp.sum(postacts3, axis=0)                      # (L, TB)
    else:
        # fast y-only path: MXU-based reduce over in_dim, scales pre-folded
        basis_flat = basis3.reshape(I * J, TB)
        y = jnp.dot(wy_ref[...].astype(md), basis_flat.astype(md),
                    preferred_element_type=jnp.float32)
        y = y + jnp.dot(wb_ref[...].astype(md), base_T.astype(md),
                        preferred_element_type=jnp.float32)
        y_ref[...] = y


def matrixkan_forward(x, grid, coef, scale_base, scale_sp, mask, basis_matrix,
                      *, k, num, tb=512, need_postacts=True, need_postspline=True,
                      matmul_dtype=jnp.float32):
    """MatrixKANLayer forward. Returns (y, preacts, postacts, postspline).

    postacts / postspline are None when the corresponding flag is False (their
    stores and wrapper transposes are skipped entirely)."""
    B, I = x.shape
    L = coef.shape[1]
    J = num + k
    G = num + 2 * k + 1
    assert grid.shape == (I, G)
    need_extras = need_postacts or need_postspline

    # Lane-dense batch tile (multiple of 128, default floor 512; sweep 2048+ at
    # scale).  Pad batch to a whole number of tiles.
    tb = max(128, (int(tb) // 128) * 128)
    tb = min(tb, _round_up(B, 128))
    Bp = _round_up(B, tb)

    x32 = x.astype(jnp.float32)
    xT = x32.T                                            # (I, B)  batch on lanes
    if Bp != B:
        xT = jnp.pad(xT, ((0, 0), (0, Bp - B)))

    grid32 = grid.astype(jnp.float32)
    h = grid32[:, 1] - grid32[:, 0]
    gparams = jnp.stack([grid32[:, 0], grid32[:, -1], 1.0 / h], axis=1)  # (I, 3)

    coef32 = coef.astype(jnp.float32)
    sbm = (mask * scale_base).astype(jnp.float32)         # (I, L)  mask folded in
    spm = (mask * scale_sp).astype(jnp.float32)           # (I, L)

    operands = [xT, gparams]
    in_specs = [
        pl.BlockSpec((I, tb), lambda b: (0, b)),          # x^T
        pl.BlockSpec((I, 3), lambda b: (0, 0)),           # grid params
    ]
    if need_extras:
        operands += [coef32.astype(matmul_dtype), sbm[:, :, None], spm[:, :, None]]
        in_specs += [
            pl.BlockSpec((I, L, J), lambda b: (0, 0, 0)),
            pl.BlockSpec((I, L, 1), lambda b: (0, 0, 0)),
            pl.BlockSpec((I, L, 1), lambda b: (0, 0, 0)),
        ]
    else:
        # fold scale_sp*mask into coef; dense (L, I*J) slab (linear in in_dim)
        Wy = (spm[:, :, None] * coef32).transpose(1, 0, 2).reshape(L, I * J)
        Wb = sbm.T                                        # (L, I)
        operands += [Wy.astype(matmul_dtype), Wb.astype(matmul_dtype)]
        in_specs += [
            pl.BlockSpec((L, I * J), lambda b: (0, 0)),
            pl.BlockSpec((L, I), lambda b: (0, 0)),
        ]

    out_shapes = [jax.ShapeDtypeStruct((L, Bp), jnp.float32)]          # y^T
    out_specs = [pl.BlockSpec((L, tb), lambda b: (0, b))]
    if need_postacts:
        out_shapes.append(jax.ShapeDtypeStruct((I, L, Bp), jnp.float32))
        out_specs.append(pl.BlockSpec((I, L, tb), lambda b: (0, 0, b)))
    if need_postspline:
        out_shapes.append(jax.ShapeDtypeStruct((I, L, Bp), jnp.float32))
        out_specs.append(pl.BlockSpec((I, L, tb), lambda b: (0, 0, b)))

    bm64 = np.asarray(basis_matrix, dtype=np.float64)
    bm_const = tuple(tuple(float(v) for v in row) for row in bm64)

    kernel = functools.partial(
        matrixkan_kernel, k=k, num=num, in_dim=I, out_dim=L, G=G, bm=bm_const,
        need_postacts=need_postacts, need_postspline=need_postspline,
        matmul_dtype=matmul_dtype)

    outs = pl.pallas_call(
        kernel,
        out_shape=tuple(out_shapes),
        grid_spec=pltpu.PrefetchScalarGridSpec(
            num_scalar_prefetch=0,
            grid=(Bp // tb,),
            in_specs=in_specs,
            out_specs=tuple(out_specs),
        ),
        compiler_params=pltpu.CompilerParams(
            dimension_semantics=("parallel",),
            # explicit budget so large batch tiles stay legal on v5e/v6e/v7x
            vmem_limit_bytes=48 * 1024 * 1024,
        ),
    )(*operands)

    outs = list(outs)
    idx = 0
    yT = outs[idx]; idx += 1
    y = yT.T[:B]                                          # (B, L)
    # preacts is a pure broadcast of x -> produced by XLA, not the kernel.
    preacts = jnp.broadcast_to(x32[:, None, :], (B, L, I))
    postacts = None
    postspline = None
    if need_postacts:
        pa = outs[idx]; idx += 1                          # (I, L, Bp)
        postacts = jnp.transpose(pa, (2, 1, 0))[:B]       # (B, L, I)
    if need_postspline:
        ps = outs[idx]; idx += 1
        postspline = jnp.transpose(ps, (2, 1, 0))[:B]
    return y, preacts, postacts, postspline


# ----------------------------------------------------------------------------
# Pure-JAX reference (mirrors the PyTorch forward semantics) for verification
# ----------------------------------------------------------------------------
def ref_forward(x, grid, coef, scale_base, scale_sp, mask, bm, k, num):
    B, I = x.shape
    L = coef.shape[1]
    J = num + k
    xe = x[:, :, None]
    gl = grid[None, :, :-1]
    gr = grid[None, :, 1:]
    intervals = (xe >= gl) & (xe < gr)                         # (B, I, G-1)
    t = jnp.argmax(intervals.astype(jnp.int32), axis=-1)       # (B, I)
    in_range = jnp.any(intervals, axis=-1)                     # (B, I)
    h = grid[:, 1] - grid[:, 0]
    floor = grid[:, 0][None, :] + t.astype(x.dtype) * h[None, :]
    u1 = (x - floor) / h[None, :]
    u = jnp.stack([u1 ** c for c in range(k + 1)], axis=-1)    # (B, I, K1)
    v = jnp.einsum('bic,cd->bid', u, bm, precision='highest')  # (B, I, K1)
    jidx = jnp.arange(J)[None, None, :]
    basis = jnp.zeros((B, I, J), x.dtype)
    for cp in range(k + 1):
        sel = (jidx == (t - k + cp)[:, :, None]) & in_range[:, :, None]
        basis = basis + jnp.where(sel, v[:, :, cp:cp + 1], 0.0)
    y_spline = jnp.einsum('bij,ilj->bil', basis, coef, precision='highest')
    base = x * jax.nn.sigmoid(x)
    y_act = mask[None] * (scale_base[None] * base[:, :, None] + scale_sp[None] * y_spline)
    y = jnp.sum(y_act, axis=1)
    preacts = jnp.broadcast_to(x[:, None, :], (B, L, I))
    postacts = jnp.transpose(y_act, (0, 2, 1))
    postspline = jnp.transpose(y_spline, (0, 2, 1))
    return y, preacts, postacts, postspline


# ----------------------------------------------------------------------------
if __name__ == "__main__":
    in_dim, out_dim, num, k = 3, 2, 5, 3       # MatrixKANLayer defaults
    noise_scale = 0.5
    B = 2048                                   # 4 lane-dense tiles of tb=512 ->
                                               # >=2 pipelined steps per v7x core

    key = jax.random.PRNGKey(0)
    k_coef, k_sb, k_x = jax.random.split(key, 3)

    grid = jnp.asarray(make_extended_grid(in_dim, num, k))           # (3, 12)
    bm = calculate_basis_matrix(k)                                   # (4, 4)

    # TODO(synk): coef uses deterministic random values of the correct shape
    # instead of the curve2coef least-squares fit used in the PyTorch __init__.
    coef = ((jax.random.uniform(k_coef, (in_dim, out_dim, num + k)) - 0.5)
            * noise_scale / num).astype(jnp.float32)
    scale_base = ((jax.random.uniform(k_sb, (in_dim, out_dim)) * 2.0 - 1.0)
                  / np.sqrt(in_dim)).astype(jnp.float32)
    mask = jnp.ones((in_dim, out_dim), jnp.float32)
    scale_sp = jnp.ones((in_dim, out_dim), jnp.float32) * mask

    x = jax.random.uniform(k_x, (B, in_dim), minval=-1.2, maxval=1.2,
                           dtype=jnp.float32)

    # 1) Full forward (module semantics: y, preacts, postacts, postspline), f32.
    outs = matrixkan_forward(x, grid, coef, scale_base, scale_sp, mask, bm,
                             k=k, num=num, tb=512)
    outs = jax.block_until_ready(outs)

    bm32 = jnp.asarray(bm, dtype=jnp.float32)
    refs = ref_forward(x, grid, coef, scale_base, scale_sp, mask, bm32, k, num)
    for o, r in zip(outs, refs):
        np.testing.assert_allclose(np.asarray(o), np.asarray(r),
                                   atol=5e-5, rtol=5e-5)

    # 2) Fast training path: extras gated off (single y output stream),
    #    bf16 MXU inputs with f32 accumulation.
    y_fast, _, _, _ = matrixkan_forward(
        x, grid, coef, scale_base, scale_sp, mask, bm, k=k, num=num, tb=512,
        need_postacts=False, need_postspline=False, matmul_dtype=jnp.bfloat16)
    y_fast = jax.block_until_ready(y_fast)
    np.testing.assert_allclose(np.asarray(y_fast), np.asarray(refs[0]),
                               atol=1e-2, rtol=1e-2)

    print("KERNEL_OK")
</pallas_src>

<mosaic_0001>
module attributes {stable_mosaic.version = 11 : i64} {
  func.func @matrixkan_kernel(%arg0: i32, %arg1: memref<3x512xf32, #tpu.memory_space<vmem>>, %arg2: memref<3x3xf32, #tpu.memory_space<vmem>>, %arg3: memref<3x2x8xf32, #tpu.memory_space<vmem>>, %arg4: memref<3x2x1xf32, #tpu.memory_space<vmem>>, %arg5: memref<3x2x1xf32, #tpu.memory_space<vmem>>, %arg6: memref<2x512xf32, #tpu.memory_space<vmem>>, %arg7: memref<3x2x512xf32, #tpu.memory_space<vmem>>, %arg8: memref<3x2x512xf32, #tpu.memory_space<vmem>>) attributes {dimension_semantics = [#tpu.dimension_semantics<parallel>], iteration_bounds = array<i64: 4>, scalar_prefetch = 0 : i64, scratch_operands = 0 : i64, tpu.core_type = #tpu.core_type<tc>, window_params = [{transform_indices = @transform_0, window_bounds = array<i64: 3, 512>}, {pipeline_mode = #tpu.pipeline_mode<synchronous>, transform_indices = @transform_1, window_bounds = array<i64: 3, 3>}, {pipeline_mode = #tpu.pipeline_mode<synchronous>, transform_indices = @transform_2, window_bounds = array<i64: 3, 2, 8>}, {pipeline_mode = #tpu.pipeline_mode<synchronous>, transform_indices = @transform_3, window_bounds = array<i64: 3, 2, 1>}, {pipeline_mode = #tpu.pipeline_mode<synchronous>, transform_indices = @transform_4, window_bounds = array<i64: 3, 2, 1>}, {transform_indices = @transform_5, window_bounds = array<i64: 2, 512>}, {transform_indices = @transform_6, window_bounds = array<i64: 3, 2, 512>}, {transform_indices = @transform_7, window_bounds = array<i64: 3, 2, 512>}]} {
    %c0 = arith.constant 0 : index
    %c0_0 = arith.constant 0 : index
    %0 = vector.load %arg1[%c0, %c0_0] : memref<3x512xf32, #tpu.memory_space<vmem>>, vector<3x512xf32>
    %c0_1 = arith.constant 0 : index
    %c0_2 = arith.constant 0 : index
    %1 = vector.load %arg2[%c0_1, %c0_2] : memref<3x3xf32, #tpu.memory_space<vmem>>, vector<3x3xf32>
    %2 = vector.extract_strided_slice %1 {offsets = [0, 0], sizes = [3, 1], strides = [1, 1]} : vector<3x3xf32> to vector<3x1xf32>
    %3 = vector.extract_strided_slice %1 {offsets = [0, 1], sizes = [3, 1], strides = [1, 1]} : vector<3x3xf32> to vector<3x1xf32>
    %4 = vector.extract_strided_slice %1 {offsets = [0, 2], sizes = [3, 1], strides = [1, 1]} : vector<3x3xf32> to vector<3x1xf32>
    %5 = vector.broadcast %2 : vector<3x1xf32> to vector<3x512xf32>
    %6 = arith.subf %0, %5 : vector<3x512xf32>
    %7 = vector.broadcast %4 : vector<3x1xf32> to vector<3x512xf32>
    %8 = arith.mulf %6, %7 : vector<3x512xf32>
    %9 = math.floor %8 : vector<3x512xf32>
    %cst = arith.constant 0.000000e+00 : f32
    %cst_3 = arith.constant 1.000000e+01 : f32
    %10 = vector.broadcast %cst : f32 to vector<3x512xf32>
    %11 = arith.maximumf %10, %9 : vector<3x512xf32>
    %12 = vector.broadcast %cst_3 : f32 to vector<3x512xf32>
    %13 = arith.minimumf %12, %11 : vector<3x512xf32>
    %14 = arith.fptosi %13 : vector<3x512xf32> to vector<3x512xi32>
    %15 = arith.subf %8, %13 : vector<3x512xf32>
    %16 = vector.broadcast %2 : vector<3x1xf32> to vector<3x512xf32>
    %17 = arith.cmpf oge, %0, %16 : vector<3x512xf32>
    %18 = vector.broadcast %3 : vector<3x1xf32> to vector<3x512xf32>
    %19 = arith.cmpf olt, %0, %18 : vector<3x512xf32>
    %20 = arith.andi %17, %19 : vector<3x512xi1>
    %21 = arith.extui %20 : vector<3x512xi1> to vector<3x512xi32>
    %22 = arith.sitofp %21 : vector<3x512xi32> to vector<3x512xf32>
    %cst_4 = arith.constant 0.000000e+00 : f32
    %23 = vector.broadcast %cst_4 : f32 to vector<3x512xf32>
    %cst_5 = arith.constant 0.000000e+00 : f32
    %24 = vector.broadcast %cst_5 : f32 to vector<3x512xf32>
    %cst_6 = arith.constant 0.000000e+00 : f32
    %25 = vector.broadcast %cst_6 : f32 to vector<3x512xf32>
    %cst_7 = arith.constant 0.000000e+00 : f32
    %26 = vector.broadcast %cst_7 : f32 to vector<3x512xf32>
    %cst_8 = arith.constant 1.000000e+00 : f32
    %27 = vector.broadcast %cst_8 : f32 to vector<3x512xf32>
    %cst_9 = arith.constant 0.166666672 : f32
    %28 = vector.broadcast %cst_9 : f32 to vector<3x512xf32>
    %29 = arith.mulf %28, %27 : vector<3x512xf32>
    %30 = arith.addf %23, %29 : vector<3x512xf32>
    %cst_10 = arith.constant 0.666666686 : f32
    %31 = vector.broadcast %cst_10 : f32 to vector<3x512xf32>
    %32 = arith.mulf %31, %27 : vector<3x512xf32>
    %33 = arith.addf %24, %32 : vector<3x512xf32>
    %cst_11 = arith.constant 0.166666672 : f32
    %34 = vector.broadcast %cst_11 : f32 to vector<3x512xf32>
    %35 = arith.mulf %34, %27 : vector<3x512xf32>
    %36 = arith.addf %25, %35 : vector<3x512xf32>
    %37 = arith.mulf %27, %15 : vector<3x512xf32>
    %cst_12 = arith.constant -5.000000e-01 : f32
    %38 = vector.broadcast %cst_12 : f32 to vector<3x512xf32>
    %39 = arith.mulf %38, %37 : vector<3x512xf32>
    %40 = arith.addf %30, %39 : vector<3x512xf32>
    %cst_13 = arith.constant 5.000000e-01 : f32
    %41 = vector.broadcast %cst_13 : f32 to vector<3x512xf32>
    %42 = arith.mulf %41, %37 : vector<3x512xf32>
    %43 = arith.addf %36, %42 : vector<3x512xf32>
    %44 = arith.mulf %37, %15 : vector<3x512xf32>
    %cst_14 = arith.constant 5.000000e-01 : f32
    %45 = vector.broadcast %cst_14 : f32 to vector<3x512xf32>
    %46 = arith.mulf %45, %44 : vector<3x512xf32>
    %47 = arith.addf %40, %46 : vector<3x512xf32>
    %cst_15 = arith.constant -1.000000e+00 : f32
    %48 = vector.broadcast %cst_15 : f32 to vector<3x512xf32>
    %49 = arith.mulf %48, %44 : vector<3x512xf32>
    %50 = arith.addf %33, %49 : vector<3x512xf32>
    %cst_16 = arith.constant 5.000000e-01 : f32
    %51 = vector.broadcast %cst_16 : f32 to vector<3x512xf32>
    %52 = arith.mulf %51, %44 : vector<3x512xf32>
    %53 = arith.addf %43, %52 : vector<3x512xf32>
    %54 = arith.mulf %44, %15 : vector<3x512xf32>
    %cst_17 = arith.constant -0.166666672 : f32
    %55 = vector.broadcast %cst_17 : f32 to vector<3x512xf32>
    %56 = arith.mulf %55, %54 : vector<3x512xf32>
    %57 = arith.addf %47, %56 : vector<3x512xf32>
    %cst_18 = arith.constant 5.000000e-01 : f32
    %58 = vector.broadcast %cst_18 : f32 to vector<3x512xf32>
    %59 = arith.mulf %58, %54 : vector<3x512xf32>
    %60 = arith.addf %50, %59 : vector<3x512xf32>
    %cst_19 = arith.constant -5.000000e-01 : f32
    %61 = vector.broadcast %cst_19 : f32 to vector<3x512xf32>
    %62 = arith.mulf %61, %54 : vector<3x512xf32>
    %63 = arith.addf %53, %62 : vector<3x512xf32>
    %cst_20 = arith.constant 0.166666672 : f32
    %64 = vector.broadcast %cst_20 : f32 to vector<3x512xf32>
    %65 = arith.mulf %64, %54 : vector<3x512xf32>
    %66 = arith.addf %26, %65 : vector<3x512xf32>
    %67 = arith.mulf %57, %22 : vector<3x512xf32>
    %68 = arith.mulf %60, %22 : vector<3x512xf32>
    %69 = arith.mulf %63, %22 : vector<3x512xf32>
    %70 = arith.mulf %66, %22 : vector<3x512xf32>
    %71 = tpu.iota {dimensions = array<i32: 1>} : vector<3x8x512xi32>
    %72 = vector.shape_cast %14 : vector<3x512xi32> to vector<3x1x512xi32>
    %cst_21 = arith.constant 0.000000e+00 : f32
    %73 = vector.broadcast %cst_21 : f32 to vector<3x8x512xf32>
    %c-3_i32 = arith.constant -3 : i32
    %74 = vector.broadcast %c-3_i32 : i32 to vector<3x1x512xi32>
    %75 = arith.addi %72, %74 : vector<3x1x512xi32>
    %76 = vector.broadcast %75 : vector<3x1x512xi32> to vector<3x8x512xi32>
    %77 = arith.cmpi eq, %71, %76 : vector<3x8x512xi32>
    %78 = vector.shape_cast %67 : vector<3x512xf32> to vector<3x1x512xf32>
    %79 = vector.shape_cast %78 : vector<3x1x512xf32> to vector<3x1x512xf32>
    %80 = vector.broadcast %79 : vector<3x1x512xf32> to vector<3x8x512xf32>
    %81 = arith.select %77, %80, %73 : vector<3x8x512xi1>, vector<3x8x512xf32>
    %c-2_i32 = arith.constant -2 : i32
    %82 = vector.broadcast %c-2_i32 : i32 to vector<3x1x512xi32>
    %83 = arith.addi %72, %82 : vector<3x1x512xi32>
    %84 = vector.broadcast %83 : vector<3x1x512xi32> to vector<3x8x512xi32>
    %85 = arith.cmpi eq, %71, %84 : vector<3x8x512xi32>
    %86 = vector.shape_cast %68 : vector<3x512xf32> to vector<3x1x512xf32>
    %87 = vector.shape_cast %86 : vector<3x1x512xf32> to vector<3x1x512xf32>
    %88 = vector.broadcast %87 : vector<3x1x512xf32> to vector<3x8x512xf32>
    %89 = arith.select %85, %88, %81 : vector<3x8x512xi1>, vector<3x8x512xf32>
    %c-1_i32 = arith.constant -1 : i32
    %90 = vector.broadcast %c-1_i32 : i32 to vector<3x1x512xi32>
    %91 = arith.addi %72, %90 : vector<3x1x512xi32>
    %92 = vector.broadcast %91 : vector<3x1x512xi32> to vector<3x8x512xi32>
    %93 = arith.cmpi eq, %71, %92 : vector<3x8x512xi32>
    %94 = vector.shape_cast %69 : vector<3x512xf32> to vector<3x1x512xf32>
    %95 = vector.shape_cast %94 : vector<3x1x512xf32> to vector<3x1x512xf32>
    %96 = vector.broadcast %95 : vector<3x1x512xf32> to vector<3x8x512xf32>
    %97 = arith.select %93, %96, %89 : vector<3x8x512xi1>, vector<3x8x512xf32>
    %c0_i32 = arith.constant 0 : i32
    %98 = vector.broadcast %c0_i32 : i32 to vector<3x1x512xi32>
    %99 = arith.addi %72, %98 : vector<3x1x512xi32>
    %100 = vector.broadcast %99 : vector<3x1x512xi32> to vector<3x8x512xi32>
    %101 = arith.cmpi eq, %71, %100 : vector<3x8x512xi32>
    %102 = vector.shape_cast %70 : vector<3x512xf32> to vector<3x1x512xf32>
    %103 = vector.shape_cast %102 : vector<3x1x512xf32> to vector<3x1x512xf32>
    %104 = vector.broadcast %103 : vector<3x1x512xf32> to vector<3x8x512xf32>
    %105 = arith.select %101, %104, %97 : vector<3x8x512xi1>, vector<3x8x512xf32>
    %106 = arith.negf %0 : vector<3x512xf32>
    %107 = math.exp %106 : vector<3x512xf32>
    %cst_22 = arith.constant 1.000000e+00 : f32
    %108 = vector.broadcast %cst_22 : f32 to vector<3x512xf32>
    %109 = arith.addf %108, %107 : vector<3x512xf32>
    %110 = arith.divf %108, %109 : vector<3x512xf32>
    %111 = arith.mulf %0, %110 : vector<3x512xf32>
    %c0_23 = arith.constant 0 : index
    %c0_24 = arith.constant 0 : index
    %c0_25 = arith.constant 0 : index
    %112 = vector.load %arg3[%c0_23, %c0_24, %c0_25] : memref<3x2x8xf32, #tpu.memory_space<vmem>>, vector<3x2x8xf32>
    %cst_26 = arith.constant dense<0.000000e+00> : vector<3x2x512xf32>
    %113 = tpu.matmul %112, %105, %cst_26 {dimension_numbers = #tpu.dot_dimension_numbers<[2], [1], [1], [2], [0, 0, 0, 1, 1, 2], [0], [0]>} : vector<3x2x8xf32>, vector<3x8x512xf32>, vector<3x2x512xf32> -> vector<3x2x512xf32>
    %c0_27 = arith.constant 0 : index
    %c0_28 = arith.constant 0 : index
    %c0_29 = arith.constant 0 : index
    %114 = vector.load %arg5[%c0_27, %c0_28, %c0_29] : memref<3x2x1xf32, #tpu.memory_space<vmem>>, vector<3x2x1xf32>
    %115 = vector.broadcast %114 : vector<3x2x1xf32> to vector<3x2x512xf32>
    %116 = arith.mulf %115, %113 : vector<3x2x512xf32>
    %c0_30 = arith.constant 0 : index
    %c0_31 = arith.constant 0 : index
    %c0_32 = arith.constant 0 : index
    %117 = vector.load %arg4[%c0_30, %c0_31, %c0_32] : memref<3x2x1xf32, #tpu.memory_space<vmem>>, vector<3x2x1xf32>
    %118 = vector.shape_cast %111 : vector<3x512xf32> to vector<3x1x512xf32>
    %119 = vector.broadcast %117 : vector<3x2x1xf32> to vector<3x2x512xf32>
    %120 = vector.broadcast %118 : vector<3x1x512xf32> to vector<3x2x512xf32>
    %121 = arith.mulf %119, %120 : vector<3x2x512xf32>
    %122 = arith.addf %116, %121 : vector<3x2x512xf32>
    %c0_33 = arith.constant 0 : index
    %c0_34 = arith.constant 0 : index
    %c0_35 = arith.constant 0 : index
    %123 = vector.load %arg8[%c0_33, %c0_34, %c0_35] : memref<3x2x512xf32, #tpu.memory_space<vmem>>, vector<3x2x512xf32>
    tpu.vector_store %arg8[%c0_33, %c0_34, %c0_35], %113 {strides = array<i32>} : memref<3x2x512xf32, #tpu.memory_space<vmem>>, vector<3x2x512xf32>,
    %c0_36 = arith.constant 0 : index
    %c0_37 = arith.constant 0 : index
    %c0_38 = arith.constant 0 : index
    %124 = vector.load %arg7[%c0_36, %c0_37, %c0_38] : memref<3x2x512xf32, #tpu.memory_space<vmem>>, vector<3x2x512xf32>
    tpu.vector_store %arg7[%c0_36, %c0_37, %c0_38], %122 {strides = array<i32>} : memref<3x2x512xf32, #tpu.memory_space<vmem>>, vector<3x2x512xf32>,
    %cst_39 = arith.constant dense<0.000000e+00> : vector<2x512xf32>
    %125 = vector.multi_reduction <add>, %122, %cst_39 [0] : vector<3x2x512xf32> to vector<2x512xf32>
    %c0_40 = arith.constant 0 : index
    %c0_41 = arith.constant 0 : index
    %126 = vector.load %arg6[%c0_40, %c0_41] : memref<2x512xf32, #tpu.memory_space<vmem>>, vector<2x512xf32>
    tpu.vector_store %arg6[%c0_40, %c0_41], %125 {strides = array<i32>} : memref<2x512xf32, #tpu.memory_space<vmem>>, vector<2x512xf32>,
    return
  }
  func.func @transform_0(%arg0: i32) -> (i32, i32) {
    %c0_i32 = arith.constant 0 : i32
    %c0_i32_0 = arith.constant 0 : i32
    return %c0_i32, %arg0 : i32, i32
  }
  func.func @transform_1(%arg0: i32) -> (i32, i32) {
    %c0_i32 = arith.constant 0 : i32
    %c0_i32_0 = arith.constant 0 : i32
    %c0_i32_1 = arith.constant 0 : i32
    return %c0_i32, %c0_i32_0 : i32, i32
  }
  func.func @transform_2(%arg0: i32) -> (i32, i32, i32) {
    %c0_i32 = arith.constant 0 : i32
    %c0_i32_0 = arith.constant 0 : i32
    %c0_i32_1 = arith.constant 0 : i32
    %c0_i32_2 = arith.constant 0 : i32
    return %c0_i32, %c0_i32_0, %c0_i32_1 : i32, i32, i32
  }
  func.func @transform_3(%arg0: i32) -> (i32, i32, i32) {
    %c0_i32 = arith.constant 0 : i32
    %c0_i32_0 = arith.constant 0 : i32
    %c0_i32_1 = arith.constant 0 : i32
    %c0_i32_2 = arith.constant 0 : i32
    return %c0_i32, %c0_i32_0, %c0_i32_1 : i32, i32, i32
  }
  func.func @transform_4(%arg0: i32) -> (i32, i32, i32) {
    %c0_i32 = arith.constant 0 : i32
    %c0_i32_0 = arith.constant 0 : i32
    %c0_i32_1 = arith.constant 0 : i32
    %c0_i32_2 = arith.constant 0 : i32
    return %c0_i32, %c0_i32_0, %c0_i32_1 : i32, i32, i32
  }
  func.func @transform_5(%arg0: i32) -> (i32, i32) {
    %c0_i32 = arith.constant 0 : i32
    %c0_i32_0 = arith.constant 0 : i32
    return %c0_i32, %arg0 : i32, i32
  }
  func.func @transform_6(%arg0: i32) -> (i32, i32, i32) {
    %c0_i32 = arith.constant 0 : i32
    %c0_i32_0 = arith.constant 0 : i32
    %c0_i32_1 = arith.constant 0 : i32
    return %c0_i32, %c0_i32_0, %arg0 : i32, i32, i32
  }
  func.func @transform_7(%arg0: i32) -> (i32, i32, i32) {
    %c0_i32 = arith.constant 0 : i32
    %c0_i32_0 = arith.constant 0 : i32
    %c0_i32_1 = arith.constant 0 : i32
    return %c0_i32, %c0_i32_0, %arg0 : i32, i32, i32
  }
}

</mosaic_0001>

<bundles_post_ra>
// kernel: tpu_custom_call.1
= control target key start
LH: loop header
LB: loop body
LE: loop exit
PB: predicated region body
PF: predicated region fallthrough
CT: control target
= control target key end

     0   :  { %s2478_s0 = inlined_call_operand.hbm [shape: f32[3,2048], index: 0, kind: input, shape index: {}]   ;;  %s2479_s1 = inlined_call_operand.vmem [shape: f32[3,3], index: 1, kind: input, shape index: {}]   ;;  %s2480_s2 = inlined_call_operand.vmem [shape: f32[3,2,8], index: 2, kind: input, shape index: {}]   ;;  %s2481_s3 = inlined_call_operand.vmem [shape: f32[3,2,1], index: 3, kind: input, shape index: {}]   ;;  %s2482_s4 = inlined_call_operand.vmem [shape: f32[3,2,1], index: 4, kind: input, shape index: {}]   ;;  %s2483_s5 = inlined_call_operand.hbm [shape: f32[2,2048], index: 5, kind: output, shape index: {0}]   ;;  %s2484_s6 = inlined_call_operand.hbm [shape: f32[3,2,2048], index: 6, kind: output, shape index: {1}]   ;;  %s2485_s7 = inlined_call_operand.hbm [shape: f32[3,2,2048], index: 7, kind: output, shape index: {2}]  }
   0x1   :  { %2491 = sst [smem:[#allocation15_spill]] %s2478_s0 }
   0x2   :  { %2492 = sst [smem:[#allocation16_spill]] %s2479_s1 }
   0x3   :  { %2493 = sst [smem:[#allocation17_spill]] %s2480_s2 }
   0x4   :  { %13 = vsyncpa [#allocation3], 0 }
   0x5   :  { %15 = vsyncpa [#allocation3 + $0x1], 0 }
   0x6   :  { %16 = vsyncpa [#allocation4], 0 }
   0x7   :  { %18 = vsyncpa [#allocation4 + $0x1], 0 }
   0x8   :  { %19 = vsyncpa [#allocation7], 0 }
   0x9   :  { %21 = vsyncpa [#allocation7 + $0x1], 0  ;;  %s1786_s24 = smov 0   ;;  %s1788_s25 = smov 0  }
   0xa   :  { %s1790_s26 = smov 0   ;;  %s1792_s27 = smov 0  }
   0xb LB: > { %s1807_s28 = sadd.s32 4294967295, %s1736_s27   ;;  %s2486_s29 = sadd.s32 4294967294, %s1736_s27   ;;  %s1736_s27 = sphi %s1792_s27, %s2524_s27   ;;  %s1732_s26 = sphi %s1790_s26, %s2523_s26   ;;  %s1728_s25 = sphi %s1788_s25, %s2522_s25   ;;  %s1724_s24 = sphi %s1786_s24, %s2521_s24  }
   0xc   : > { %s1811_s30 = sadd.s32 1, %s1736_s27   ;;  %s34_s8 = sadd.s32 1, %s1732_s26 }
   0xd   : > { %s31_s9 = ssub.s32 %s1736_s27, %s1811_s30  ;;  %p41_p0 = scmp.ne.s32.totalorder %s1732_s26, %s1728_s25 }
   0xe   : > { %p32_p1 = scmp.eq.s32.totalorder %s31_s9, 0  ;;  %p42_p2 = scmp.eq.s32.totalorder %s1736_s27, 0 }
   0xf   : > { %p47_p3 = scmp.ne.s32.totalorder %s1728_s25, %s1724_s24  ;;  %p48_p4 = scmp.eq.s32.totalorder %s1807_s28, 0 }
  0x10   : > { %s1823_s10 = scalar_select %p32_p1, %s1732_s26, %s34_s8  }
  0x11   : > { %p1825_p5 = por %p42_p2, %p41_p0  ;;  %p1829_p6 = por %p48_p4, %p47_p3 }
  0x12   : > { %2494 = sst [smem:[#allocation12_spill]] %s1823_s10  ;;  %p155_p7 = scmp.eq.s32.totalorder %s1807_s28, 3 }
  0x13   : > { %p161_p8 = scmp.eq.s32.totalorder %s2486_s29, 3  ;;  %p1524_p9 = scmp.lt.s32.totalorder %s1736_s27, 4 }
  0x14   : > { %p1837_p10 = por %p155_p7, %p41_p0  ;;  %s245_s15 = sand.u32 1, %s1732_s26  }
  0x15   : > { %p1841_p11 = por %p161_p8, %p47_p3  ;;  %s1493_s16 = sshll.u32 %s1736_s27, 4 }
  0x16   : > { %s1462_s17 = sshll.u32 %s245_s15, 4  ;;  %s2499_s0 = sld [smem:[#allocation15_spill]] }
  0x17   : > { %s249_s22 = scalar_lea.vmem [#allocation2], %s1462_s17  ;;  %p1852_p12 = pnand %p1524_p9, %p1825_p5 }
  0x18   : > { %s258_s23 = sshll.u32 %s249_s22, 4  ;;  %p1465_p13 = scmp.ge.s32.totalorder %s1736_s27, 1  ;;  %s259_s23 = int_to_ptr.vmem [resolvable:$true] %s258_s23 }
  0x19   : > { %p263_p0 = scmp.lt.s32.totalorder %s1736_s27, 5  ;;  %s246_s9 = scalar_lea.sflag [#allocation3], %s245_s15 }
  0x1a   : > { %p1584_p2 = pneg %p1852_p12 }
  0x1c   : > { %s254_s20 = scalar_lea.hbm %s2499_s0, %s1493_s16  ;;  %s1587_s11 = scalar_lea.hbm %s2499_s0, 64 }
  0x1d   : > { %s256_s21 = sshll.u32 %s254_s20, 4  ;;  %s257_s21 = int_to_ptr.hbm [resolvable:$true] %s256_s21 }
  0x1e   : > { %s1580_s29 = sshra.s32 %s257_s21, 4  ;;  %s1581_s29 = int_to_ptr.hbm [resolvable:$true] %s1580_s29 }
  0x1f   : > { %s1582_s10 = scalar_lea.hbm %s1581_s29, 16  ;;  %p1588_p5 = scmp.lt.s32.totalorder %s1581_s29, %s2499_s0 }
  0x20   : > { %p1583_p1 = scmp.ne.s32.totalorder %s1581_s29, %s1582_s10  ;;  %p1589_p7 = scmp.lt.s32.totalorder %s1587_s11, %s1582_s10 }
  0x22   : > { %p1585_p3 = pnand %p1584_p2, %p1583_p1  ;;  %p1590_p8 = por %p1589_p7, %p1588_p5 }
  0x24   : > { %p1586_p4 = pneg %p1585_p3 }
  0x26   : > { %p1591_p9 = pnand %p1590_p8, %p1586_p4 }
  0x28   : > { %1594 = shalt.err (!%p1591_p9)
}
  0x29   : > { %1513 = dma.hbm_to_vmem [thread:$0]  (!%p1852_p12), %s257_s21, 256, %s259_s23, %s246_s9  }
  0x2a   : > { %p264_p1 = pnand %p1465_p13, %p263_p0 }
  0x2c   : > { %267 = sbr.rel (%p264_p1) target bundleno = 458 (0x1ca), region = 40 }
  0x31   : > { %s1873_s15 = sand.u32 1, %s1728_s25  }
  0x32   : > { %s1466_s29 = sshll.u32 %s1873_s15, 4  ;;  %s270_s10 = scalar_lea.sflag [#allocation3], %s1873_s15 }
  0x33   : > { %s273_s20 = scalar_lea.vmem [#allocation2], %s1466_s29 }
  0x34   : > { %1711 = dma.done.wait (%p1829_p6), %s270_s10, 256  }
  0x35   : > { %1713 = vsyncadd (%p1829_p6), %s270_s10, 4294967040  ;;  %v1738_v0 = vmov 1   ;;  %v1739_v1 = vmov 0   ;;  %s2501_s1 = sld [smem:[#allocation16_spill]]  ;;  %v1740_v3 = vmov 2   ;;  %v417_v23 = vlaneseq  ;;  %s1497_s16 = smul.u32 24, %s1873_s15 }
  0x36   : > { %1568 = vset.pattern.permute.xlu1 %v1738_v0  ;;  %1566 = vset.pattern.permute.xlu0 %v1739_v1  ;;  %v1741_v4 = vmov 839922192   ;;  %v1884_v10 = vld [vmem:[%s273_s20] sm:$0x77]  ;;  %v1886_v11 = vld [vmem:[%s273_s20 + $0x8] sm:$0x77] }
  0x37   : > { %1570 = vset.pattern.permute.xlu2 %v1739_v1  ;;  %v327_v5 = vunpack.c.l.s4 %v1741_v4  ;;  %vm422_vm6 = vcmask 1040384   ;;  %vm424_vm7 = vcmask 1042434   ;;  %v1742_v30 = vmov 0.0   ;;  %s2506_s2 = sld [smem:[#allocation17_spill]]  ;;  %s2320_s17 = scalar_lea.vmem [#allocation8], %s1497_s16 }
  0x38   : > { %vm428_vm8 = vcmask 1041409   ;;  %vm430_vm9 = vcmask 1043459   ;;  %v1900_v33 = vshrl.u32 %v417_v23, 7  ;;  %vm432_vm10 = vcmask 1042433   ;;  %s2330_s11 = scalar_lea.vmem [#allocation6], %s1497_s16  ;;  %s2356_s18 = sshll.u32 %s1807_s28, 3 }
  0x39   : > { %v328_v7 = vunpack.c.0.s8 %v327_v5  ;;  %vm436_vm11 = vcmask 1044484   ;;  %vm438_vm12 = vcmask 1043458   ;;  %vm426_vm13 = vcmask 1041408   ;;  %s1303_s19 = sshll.u32 %s2330_s11, 4  ;;  %s1320_s29 = sshll.u32 %s2320_s17, 4  ;;  %s2367_s19 = int_to_ptr.vmem [resolvable:$true] %s1303_s19  ;;  %s2370_s29 = int_to_ptr.vmem [resolvable:$true] %s1320_s29 }
  0x3a   : > { %s1302_s21 = scalar_lea.hbm %s2484_s6, %s2356_s18  ;;  %s1467_s22 = sshll.u32 %s1873_s15, 3 }
  0x3b   : > { %v321_v2 = vld [vmem:[%s2501_s1] sm:$0x7]  ;;  %s1270_s12 = sand.u32 1, %s1807_s28   ;;  %s2375_s23 = sshll.u32 %s1302_s21, 4  ;;  %s1306_s23 = int_to_ptr.hbm [resolvable:$true] %s2375_s23 }
  0x3c   : > { %356 = vperm.xlu1 %1568, %v321_v2   ;;  %324 = vperm.xlu0 %1566, %v321_v2   ;;  %s1319_s16 = scalar_lea.hbm %s2485_s7, %s2356_s18  ;;  %s1287_s0 = scalar_lea.hbm %s2483_s5, %s2356_s18 }
  0x3d   : > { %s2390_s28 = sshll.u32 %s1319_s16, 4  ;;  %s2392_s21 = scalar_lea.vmem [#allocation5], %s1467_s22 }
  0x3e   : > { %2511 = sst [smem:[#allocation13_spill]] %s2390_s28  ;;  %s1289_s8 = sshll.u32 %s2392_s21, 4  ;;  %s2402_s8 = int_to_ptr.vmem [resolvable:$true] %s1289_s8 }
  0x3f   : > { %s2395_s18 = sshll.u32 %s1287_s0, 4  ;;  %s1624_s22 = sshra.s32 %s1306_s23, 4  ;;  %s1625_s22 = int_to_ptr.hbm [resolvable:$true] %s1624_s22 }
  0x40   : > { %2512 = sst [smem:[#allocation14_spill]] %s2395_s18  ;;  %s1626_s0 = scalar_lea.hbm %s1625_s22, 24 }
  0x41   : > { %p1627_p6 = scmp.ne.s32.totalorder %s1625_s22, %s1626_s0  ;;  %s1630_s10 = scalar_lea.hbm %s2484_s6, 96 }
  0x42   : > { %p1631_p0 = scmp.lt.s32.totalorder %s1625_s22, %s2484_s6  ;;  %p1632_p2 = scmp.lt.s32.totalorder %s1630_s10, %s1626_s0 }
  0x43   : > { %p1628_p12 = pnand %p1627_p6, %p1837_p10 }
  0x44   : > { %1567 = vset.pattern.permute.xlu0 %v1740_v3  ;;  %1569 = vset.pattern.permute.xlu1 %v1739_v1  ;;  %p1633_p3 = por %p1632_p2, %p1631_p0 }
  0x45   : > { %334 = vperm.xlu0 %1567, %v321_v2   ;;  %p1629_p13 = pneg %p1628_p12 }
  0x47   : > { %p1634_p4 = pnand %p1633_p3, %p1629_p13 }
  0x4d   : > { %1571 = vset.pattern.permute.xlu0 %v1739_v1 }
  0xae   : > { %v325_v6 = vpop.permute.xlu0 %324  ;;  %v357_v9 = vpop.permute.xlu1 %356 }
  0xaf   : > { %v329_v8 = vperm.slane %v325_v6, %v328_v7  ;;  %v361_v13 = vperm.slane %v357_v9, %v328_v7 }
  0xb1   : > { %v331_v14 = vsub.f32 %v1884_v10, %v329_v8  ;;  %v332_v15 = vsub.f32 %v1886_v11, %v329_v8  ;;  %vm363_vm0 = vcmp.lt.f32.partialorder %v1884_v10, %v361_v13  ;;  %vm353_vm1 = vcmp.ge.f32.partialorder %v1884_v10, %v329_v8 }
  0xb2   : > { %vm364_vm2 = vcmp.lt.f32.partialorder %v1886_v11, %v361_v13  ;;  %vm354_vm3 = vcmp.ge.f32.partialorder %v1886_v11, %v329_v8  ;;  %vm365_vm4 = vmand %vm353_vm1, %vm363_vm0 }
  0xb3   : > { %vm366_vm5 = vmand %vm354_vm3, %vm364_vm2  ;;  %v1896_v31 = vsel %vm365_vm4, 1.0, %v1742_v30 }
  0xb4   : > { %v1898_v32 = vsel %vm366_vm5, 1.0, %v1742_v30 }
  0xb7   : > { %v335_v12 = vpop.permute.xlu0 %334 }
  0xb8   : > { %v339_v16 = vperm.slane %v335_v12, %v328_v7 }
  0xba   : > { %v341_v17 = vmul.f32 %v339_v16, %v331_v14  ;;  %v342_v18 = vmul.f32 %v339_v16, %v332_v15 }
  0xbc   : > { %v343_v19 = vfloor.f32 %v341_v17  ;;  %v344_v20 = vfloor.f32 %v342_v18 }
  0xbe   : > { %v345_v21 = vmax.f32 %v343_v19, 0.0  ;;  %v346_v22 = vmax.f32 %v344_v20, 0.0 }
  0xc0   : > { %v347_v24 = vmin.f32 %v345_v21, 10.0  ;;  %v348_v25 = vmin.f32 %v346_v22, 10.0 }
  0xc2   : > { %v1894_v26 = vcvt.f32.s32 %v347_v24  ;;  %v1501_v27 = vcvt.f32.s32 %v348_v25  ;;  %v351_v28 = vsub.f32 %v341_v17, %v347_v24  ;;  %v352_v29 = vsub.f32 %v342_v18, %v348_v25 }
  0xc4   : > { %v371_v34 = vmul.f32 -0.5, %v351_v28  ;;  %v372_v35 = vmul.f32 -0.5, %v352_v29  ;;  %v375_v36 = vmul.f32 0.5, %v351_v28  ;;  %v376_v37 = vmul.f32 0.5, %v352_v29 }
  0xc5   : > { %v379_v38 = vmul.f32 %v351_v28, %v351_v28  ;;  %v380_v39 = vmul.f32 %v352_v29, %v352_v29  ;;  %v419_v40 = vrot.slane %v1894_v26, 3  ;;  %v420_v41 = vrot.slane %v1501_v27, 6 }
  0xc6   : > { %v373_v42 = vadd.f32 0.16666667, %v371_v34  ;;  %v374_v43 = vadd.f32 0.16666667, %v372_v35  ;;  %v377_v44 = vadd.f32 0.16666667, %v375_v36 }
  0xc7   : > { %v378_v45 = vadd.f32 0.16666667, %v376_v37  ;;  %v381_v46 = vmul.f32 0.5, %v379_v38  ;;  %v382_v47 = vmul.f32 0.5, %v380_v39  ;;  %v385_v48 = vmul.f32 -1.0, %v379_v38 }
  0xc8   : > { %v386_v49 = vmul.f32 -1.0, %v380_v39  ;;  %v391_v50 = vmul.f32 %v379_v38, %v351_v28  ;;  %v392_v51 = vmul.f32 %v380_v39, %v352_v29  ;;  %v421_v52 = vrot.slane %v1501_v27, 1 }
  0xc9   : > { %v383_v53 = vadd.f32 %v381_v46, %v373_v42  ;;  %v384_v54 = vadd.f32 %v382_v47, %v374_v43  ;;  %v387_v55 = vadd.f32 0.6666667, %v385_v48  ;;  %v389_v56 = vadd.f32 %v381_v46, %v377_v44 }
  0xca   : > { %v388_v57 = vadd.f32 0.6666667, %v386_v49  ;;  %v390_v58 = vadd.f32 %v382_v47, %v378_v45  ;;  %v393_v59 = vmul.f32 -0.16666667, %v391_v50  ;;  %v394_v60 = vmul.f32 -0.16666667, %v392_v51 }
  0xcb   : > { %v397_v61 = vmul.f32 0.5, %v391_v50  ;;  %v398_v62 = vmul.f32 0.5, %v392_v51  ;;  %v401_v63 = vmul.f32 -0.5, %v391_v50  ;;  %v402_v0 = vmul.f32 -0.5, %v392_v51 }
  0xcc   : > { %v395_v1 = vadd.f32 %v393_v59, %v383_v53  ;;  %v396_v2 = vadd.f32 %v394_v60, %v384_v54  ;;  %v423_v3 = vsel %vm422_vm6, %v1894_v26, %v419_v40  ;;  %v425_v4 = vsel %vm424_vm7, %v420_v41, %v421_v52 }
  0xcd   : > { %v399_v5 = vadd.f32 %v397_v61, %v387_v55  ;;  %v400_v6 = vadd.f32 %v398_v62, %v388_v57  ;;  %v403_v7 = vadd.f32 %v401_v63, %v389_v56  ;;  %v404_v8 = vadd.f32 %v402_v0, %v390_v58 }
  0xce   : > { %v1907_v9 = vmul.f32 %v1896_v31, %v395_v1  ;;  %v410_v12 = vmul.f32 %v1898_v32, %v396_v2  ;;  %v429_v13 = vsel %vm428_vm8, %v1894_v26, %v419_v40  ;;  %v431_v14 = vsel %vm430_vm9, %v420_v41, %v421_v52 }
  0xcf   : > { %v1914_v15 = vmul.f32 %v1896_v31, %v399_v5  ;;  %v1917_v16 = vmul.f32 %v1896_v31, %v403_v7  ;;  %v414_v17 = vmul.f32 %v1898_v32, %v404_v8  ;;  %v433_v18 = vsel %vm432_vm10, %v429_v13, %v431_v14 }
  0xd0   : > { %v1921_v19 = vrot.slane %v433_v18, 1  ;;  %v435_v20 = vsel %vm424_vm7, %v1894_v26, %v419_v40  ;;  %v437_v21 = vsel %vm436_vm11, %v420_v41, %v421_v52  ;;  %v405_v22 = vmul.f32 0.16666667, %v391_v50 }
  0xd1   : > { %v439_v23 = vsel %vm438_vm12, %v435_v20, %v437_v21  ;;  %v406_v24 = vmul.f32 0.16666667, %v392_v51  ;;  %v412_v25 = vmul.f32 %v1898_v32, %v400_v6  ;;  %v1929_v27 = vsel %vm426_vm13, %v423_v3, %v425_v4 }
  0xd2   : > { %v1931_v28 = vrot.slane %v439_v23, 2  ;;  %v1934_v29 = vmul.f32 %v1896_v31, %v405_v22  ;;  %v1937_v30 = vadd.s32 4294967293, %v1929_v27  ;;  %v1940_v26 = vrot.slane %v1907_v9, 3 }
  0xd3   : > { %v416_v34 = vmul.f32 %v1898_v32, %v406_v24  ;;  %v1943_v35 = vrot.slane %v410_v12, 6  ;;  %v1945_v36 = vrot.slane %v410_v12, 1  ;;  %v1948_v37 = vadd.s32 4294967294, %v1929_v27 }
  0xd4   : > { %v444_v38 = vperm.slane %v1937_v30, 0  ;;  %v473_v31 = vsel %vm422_vm6, %v1907_v9, %v1940_v26  ;;  %v1955_v39 = vrot.slane %v1914_v15, 3  ;;  %v1957_v40 = vrot.slane %v412_v25, 6 }
  0xd5   : > { %v474_v32 = vsel %vm424_vm7, %v1943_v35, %v1945_v36  ;;  %v523_v41 = vperm.slane %v1948_v37, 0  ;;  %v1963_v42 = vrot.slane %v412_v25, 1  ;;  %v1966_v43 = vadd.s32 4294967295, %v1929_v27 }
  0xd6   : > { %vm456_vm14 = vcmp.eq.s32.totalorder %v1900_v33, %v444_v38  ;;  %v1970_v44 = vsel %vm426_vm13, %v473_v31, %v474_v32  ;;  %v552_v45 = vsel %vm422_vm6, %v1914_v15, %v1955_v39  ;;  %v1976_v46 = vrot.slane %v1917_v16, 3 }
  0xd7   : > { %v484_v47 = vperm.slane %v1970_v44, 0  ;;  %vm535_vm15 = vcmp.eq.s32.totalorder %v1900_v33, %v523_v41  ;;  %v553_v48 = vsel %vm424_vm7, %v1957_v40, %v1963_v42  ;;  %v602_v49 = vperm.slane %v1966_v43, 0 }
  0xd8   : > { %v1985_v50 = vsel %vm426_vm13, %v552_v45, %v553_v48  ;;  %v1987_v51 = vrot.slane %v414_v17, 6  ;;  %v1989_v52 = vrot.slane %v414_v17, 1  ;;  %v631_v53 = vsel %vm422_vm6, %v1917_v16, %v1976_v46 }
  0xd9   : > { %v508_v54 = vsel %vm456_vm14, %v484_v47, 0.0  ;;  %v563_v55 = vperm.slane %v1985_v50, 0  ;;  %vm1996_vm0 = vcmp.eq.s32.totalorder %v1900_v33, %v602_v49  ;;  %v678_v57 = vperm.slane %v1929_v27, 0 }
  0xda   : > { %v632_v58 = vsel %vm424_vm7, %v1987_v51, %v1989_v52  ;;  %v2005_v59 = vrot.slane %v1934_v29, 3  ;;  %v2007_v60 = vrot.slane %v416_v34, 6  ;;  %v2009_v61 = vrot.slane %v416_v34, 1 }
  0xdb   : > { %v587_v62 = vsel %vm535_vm15, %v563_v55, %v508_v54  ;;  %v633_v63 = vsel %vm426_vm13, %v631_v53, %v632_v58  ;;  %vm2013_vm1 = vcmp.eq.s32.totalorder %v1900_v33, %v678_v57  ;;  %v445_v1 = vperm.slane %v1937_v30, 1 }
  0xdc   : > { %v642_v2 = vperm.slane %v633_v63, 0  ;;  %v707_v3 = vsel %vm422_vm6, %v1934_v29, %v2005_v59  ;;  %v708_v4 = vsel %vm424_vm7, %v2007_v60, %v2009_v61  ;;  %v485_v5 = vperm.slane %v1970_v44, 1 }
  0xdd   : > { %v709_v6 = vsel %vm426_vm13, %v707_v3, %v708_v4  ;;  %vm457_vm2 = vcmp.eq.s32.totalorder %v1900_v33, %v445_v1  ;;  %v524_v7 = vperm.slane %v1948_v37, 1  ;;  %v564_v8 = vperm.slane %v1985_v50, 1  ;;  %v794_v1 = vld [vmem:[%s2506_s2] sm:$0x3] }
  0xde   : > { %v666_v12 = vsel %vm1996_vm0, %v642_v2, %v587_v62  ;;  %v718_v13 = vperm.slane %v709_v6, 0  ;;  %v509_v14 = vsel %vm457_vm2, %v485_v5, 0.0  ;;  %v603_v17 = vperm.slane %v1966_v43, 1 }
  0xdf   : > { %vm536_vm3 = vcmp.eq.s32.totalorder %v1900_v33, %v524_v7  ;;  %v643_v18 = vperm.slane %v633_v63, 1  ;;  %v679_v20 = vperm.slane %v1929_v27, 1  ;;  %v719_v21 = vperm.slane %v709_v6, 1 }
  0xe0   : > { %v742_v22 = vsel %vm2013_vm1, %v718_v13, %v666_v12  ;;  %v588_v23 = vsel %vm536_vm3, %v564_v8, %v509_v14  ;;  %vm615_vm4 = vcmp.eq.s32.totalorder %v1900_v33, %v603_v17  ;;  %v446_v24 = vperm.slane %v1937_v30, 2 }
  0xe1   : > { %816 = vmatpush.msra.mxu0 %v742_v22  ;;  %v667_v25 = vsel %vm615_vm4, %v643_v18, %v588_v23  ;;  %vm691_vm5 = vcmp.eq.s32.totalorder %v1900_v33, %v679_v20  ;;  %v486_v34 = vperm.slane %v1970_v44, 2  ;;  %v525_v38 = vperm.slane %v1948_v37, 2 }
  0xe2   : > { %v743_v31 = vsel %vm691_vm5, %v719_v21, %v667_v25  ;;  %vm458_vm14 = vcmp.eq.s32.totalorder %v1900_v33, %v446_v24  ;;  %v565_v32 = vperm.slane %v1985_v50, 2  ;;  %v604_v41 = vperm.slane %v1966_v43, 2 }
  0xe3   : > { %836 = vmatpush.msra.mxu1 %v743_v31  ;;  %v510_v45 = vsel %vm458_vm14, %v486_v34, 0.0  ;;  %vm537_vm15 = vcmp.eq.s32.totalorder %v1900_v33, %v525_v38  ;;  %v644_v47 = vperm.slane %v633_v63, 2  ;;  %v680_v48 = vperm.slane %v1929_v27, 2 }
  0xe4   : > { %v589_v49 = vsel %vm537_vm15, %v565_v32, %v510_v45  ;;  %vm616_vm0 = vcmp.eq.s32.totalorder %v1900_v33, %v604_v41  ;;  %v720_v53 = vperm.slane %v709_v6, 2  ;;  %v447_v54 = vperm.slane %v1937_v30, 3 }
  0xe5   : > { %v668_v55 = vsel %vm616_vm0, %v644_v47, %v589_v49  ;;  %vm692_vm1 = vcmp.eq.s32.totalorder %v1900_v33, %v680_v48  ;;  %v487_v56 = vperm.slane %v1970_v44, 3  ;;  %v526_v57 = vperm.slane %v1948_v37, 3 }
  0xe6   : > { %v744_v58 = vsel %vm692_vm1, %v720_v53, %v668_v55  ;;  %vm459_vm2 = vcmp.eq.s32.totalorder %v1900_v33, %v447_v54  ;;  %v566_v62 = vperm.slane %v1985_v50, 3  ;;  %v605_v0 = vperm.slane %v1966_v43, 3 }
  0xe7   : > { %856 = vmatpush.msra.mxu2 %v744_v58  ;;  %v511_v30 = vsel %vm459_vm2, %v487_v56, 0.0  ;;  %vm538_vm3 = vcmp.eq.s32.totalorder %v1900_v33, %v526_v57  ;;  %v645_v2 = vperm.slane %v633_v63, 3  ;;  %v681_v44 = vperm.slane %v1929_v27, 3 }
  0xe8   : > { %v590_v3 = vsel %vm538_vm3, %v566_v62, %v511_v30  ;;  %vm617_vm4 = vcmp.eq.s32.totalorder %v1900_v33, %v605_v0  ;;  %v721_v37 = vperm.slane %v709_v6, 3  ;;  %vm797_vm5 = vcmask 64512  }
  0xe9   : > { %v669_v4 = vsel %vm617_vm4, %v645_v2, %v590_v3  ;;  %vm693_vm14 = vcmp.eq.s32.totalorder %v1900_v33, %v681_v44  ;;  %1472 = vmatmul.msk.f32.vlgmr.msra.gmra.mxu0 %vm797_vm5, %v794_v1  ;;  %1473 = vmatmul.msk.f32.vlgmr.msra.gmra.mxu1 %vm797_vm5, %v794_v1  ;;  %v2064_v43 = vadd.s32 4294967293, %v1921_v19  ;;  %v476_v50 = vsel %vm428_vm8, %v1907_v9, %v1940_v26 }
  0xea   : > { %v745_v27 = vsel %vm693_vm14, %v721_v37, %v669_v4  ;;  %1474 = vmatmul.msk.f32.vlgmr.msra.gmra.mxu2 %vm797_vm5, %v794_v1  ;;  %v477_v63 = vsel %vm430_vm9, %v1943_v35, %v1945_v36  ;;  %v2074_v5 = vadd.s32 4294967294, %v1921_v19  ;;  %v555_v6 = vsel %vm428_vm8, %v1914_v15, %v1955_v39 }
  0xeb   : > { %876 = vmatpush.msra.mxu3 %v745_v27  ;;  %v448_v7 = vperm.slane %v2064_v43, 0  ;;  %v478_v8 = vsel %vm432_vm10, %v476_v50, %v477_v63  ;;  %v556_v12 = vsel %vm430_vm9, %v1957_v40, %v1963_v42  ;;  %v2085_v13 = vadd.s32 4294967295, %v1921_v19  ;;  %v2142_v27 = vld [vmem:[%s2506_s2 + $0x2] sm:$0x3]  ;;  %v1047_v63 = vld [vmem:[%s2482_s4] sm:$0x3] }
  0xec   : > { %1475 = vmatmul.msk.f32.vlgmr.msra.gmra.mxu3 %vm797_vm5, %v794_v1  ;;  %v2088_v14 = vrot.slane %v478_v8, 1  ;;  %v527_v17 = vperm.slane %v2074_v5, 0  ;;  %v557_v18 = vsel %vm432_vm10, %v555_v6, %v556_v12  ;;  %v634_v20 = vsel %vm428_vm8, %v1917_v16, %v1976_v46  ;;  %1052 = vperm.xlu1 %1569, %v1047_v63  }
  0xed   : > { %vm460_vm15 = vcmp.eq.s32.totalorder %v1900_v33, %v448_v7  ;;  %v2096_v21 = vrot.slane %v557_v18, 1  ;;  %v606_v22 = vperm.slane %v2085_v13, 0  ;;  %v635_v23 = vsel %vm430_vm9, %v1987_v51, %v1989_v52 }
  0xee   : > { %v488_v24 = vperm.slane %v2088_v14, 0  ;;  %vm539_vm0 = vcmp.eq.s32.totalorder %v1900_v33, %v527_v17  ;;  %v636_v25 = vsel %vm432_vm10, %v634_v20, %v635_v23  ;;  %v682_v34 = vperm.slane %v1921_v19, 0  ;;  %v1048_v20 = vld [vmem:[%s2482_s4 + $0x2] sm:$0x3] }
  0xef   : > { %v567_v38 = vperm.slane %v2096_v21, 0  ;;  %vm618_vm1 = vcmp.eq.s32.totalorder %v1900_v33, %v606_v22  ;;  %v2108_v31 = vrot.slane %v636_v25, 1  ;;  %v710_v32 = vsel %vm428_vm8, %v1934_v29, %v2005_v59  ;;  %v1079_v22 = vld [vmem:[%s2481_s3 + $0x4] sm:$0x3]  ;;  %1057 = vperm.xlu2 %1570, %v1048_v20  }
  0xf0   : > { %v512_v41 = vsel %vm460_vm15, %v488_v24, 0.0  ;;  %vm2114_vm2 = vcmp.eq.s32.totalorder %v1900_v33, %v682_v34  ;;  %v711_v47 = vsel %vm430_vm9, %v2007_v60, %v2009_v61  ;;  %v449_v48 = vperm.slane %v2064_v43, 1  ;;  %1108 = vperm.xlu0 %1571, %v1079_v22  }
  0xf1   : > { %v591_v49 = vsel %vm539_vm0, %v567_v38, %v512_v41  ;;  %v646_v53 = vperm.slane %v2108_v31, 0  ;;  %v712_v54 = vsel %vm432_vm10, %v710_v32, %v711_v47  ;;  %v489_v55 = vperm.slane %v2088_v14, 1 }
  0xf2   : > { %v2125_v56 = vrot.slane %v712_v54, 1  ;;  %vm461_vm3 = vcmp.eq.s32.totalorder %v1900_v33, %v449_v48  ;;  %v528_v57 = vperm.slane %v2074_v5, 1  ;;  %v568_v58 = vperm.slane %v2096_v21, 1 }
  0xf3   : > { %v670_v62 = vsel %vm618_vm1, %v646_v53, %v591_v49  ;;  %v513_v0 = vsel %vm461_vm3, %v489_v55, 0.0  ;;  %v607_v1 = vperm.slane %v2085_v13, 1  ;;  %v647_v30 = vperm.slane %v2108_v31, 1 }
  0xf4   : > { %v722_v2 = vperm.slane %v2125_v56, 0  ;;  %vm540_vm4 = vcmp.eq.s32.totalorder %v1900_v33, %v528_v57  ;;  %v683_v44 = vperm.slane %v1921_v19, 1  ;;  %v723_v3 = vperm.slane %v2125_v56, 1 }
  0xf5   : > { %v592_v37 = vsel %vm540_vm4, %v568_v58, %v513_v0  ;;  %vm619_vm14 = vcmp.eq.s32.totalorder %v1900_v33, %v607_v1  ;;  %v450_v4 = vperm.slane %v2064_v43, 2  ;;  %v490_v50 = vperm.slane %v2088_v14, 2 }
  0xf6   : > { %v746_v6 = vsel %vm2114_vm2, %v722_v2, %v670_v62  ;;  %v671_v7 = vsel %vm619_vm14, %v647_v30, %v592_v37  ;;  %vm695_vm15 = vcmp.eq.s32.totalorder %v1900_v33, %v683_v44  ;;  %v529_v8 = vperm.slane %v2074_v5, 2 }
  0xf7   : > { %899 = vmatpush.msrb.mxu0 %v746_v6  ;;  %v747_v12 = vsel %vm695_vm15, %v723_v3, %v671_v7  ;;  %vm462_vm0 = vcmp.eq.s32.totalorder %v1900_v33, %v450_v4  ;;  %v569_v17 = vperm.slane %v2096_v21, 2  ;;  %v608_v18 = vperm.slane %v2085_v13, 2 }
  0xf8   : > { %919 = vmatpush.msrb.mxu1 %v747_v12  ;;  %v514_v23 = vsel %vm462_vm0, %v490_v50, 0.0  ;;  %vm541_vm1 = vcmp.eq.s32.totalorder %v1900_v33, %v529_v8  ;;  %v648_v24 = vperm.slane %v2108_v31, 2  ;;  %v684_v25 = vperm.slane %v1921_v19, 2  ;;  %1476 = vmatmul.msk.f32.vlgmr.msrb.gmra.mxu0 %vm797_vm5, %v2142_v27  ;;  %v1049_v8 = vld [vmem:[%s2482_s4 + $0x4] sm:$0x3] }
  0xf9   : > { %v593_v34 = vsel %vm541_vm1, %v569_v17, %v514_v23  ;;  %vm620_vm2 = vcmp.eq.s32.totalorder %v1900_v33, %v608_v18  ;;  %v724_v38 = vperm.slane %v2125_v56, 2  ;;  %v451_v32 = vperm.slane %v2064_v43, 3  ;;  %1477 = vmatmul.msk.f32.vlgmr.msrb.gmra.mxu1 %vm797_vm5, %v2142_v27  ;;  %v1078_v43 = vld [vmem:[%s2481_s3 + $0x2] sm:$0x3] }
  0xfa   : > { %v672_v41 = vsel %vm620_vm2, %v648_v24, %v593_v34  ;;  %vm696_vm3 = vcmp.eq.s32.totalorder %v1900_v33, %v684_v25  ;;  %v491_v45 = vperm.slane %v2088_v14, 3  ;;  %v530_v47 = vperm.slane %v2074_v5, 3  ;;  %1103 = vperm.xlu1 %1569, %v1078_v43  }
  0xfb   : > { %v748_v48 = vsel %vm696_vm3, %v724_v38, %v672_v41  ;;  %vm463_vm4 = vcmp.eq.s32.totalorder %v1900_v33, %v451_v32  ;;  %v570_v49 = vperm.slane %v2096_v21, 3  ;;  %v609_v53 = vperm.slane %v2085_v13, 3  ;;  %v796_v41 = vld [vmem:[%s2506_s2 + $0x4] sm:$0x3] }
  0xfc   : > { %939 = vmatpush.msrb.mxu2 %v748_v48  ;;  %v515_v54 = vsel %vm463_vm4, %v491_v45, 0.0  ;;  %vm542_vm14 = vcmp.eq.s32.totalorder %v1900_v33, %v530_v47  ;;  %v649_v14 = vperm.slane %v2108_v31, 3  ;;  %v685_v5 = vperm.slane %v1921_v19, 3 }
  0xfd   : > { %v594_v55 = vsel %vm542_vm14, %v570_v49, %v515_v54  ;;  %vm621_vm15 = vcmp.eq.s32.totalorder %v1900_v33, %v609_v53  ;;  %v725_v57 = vperm.slane %v2125_v56, 3  ;;  %v2185_v21 = vadd.s32 4294967293, %v1931_v28  ;;  %1478 = vmatmul.msk.f32.vlgmr.msrb.gmra.mxu2 %vm797_vm5, %v2142_v27  ;;  %v1077_v56 = vld [vmem:[%s2481_s3] sm:$0x3] }
  0xfe   : > { %v673_v13 = vsel %vm621_vm15, %v649_v14, %v594_v55  ;;  %vm697_vm0 = vcmp.eq.s32.totalorder %v1900_v33, %v685_v5  ;;  %v480_v31 = vsel %vm424_vm7, %v1907_v9, %v1940_v26  ;;  %v481_v19 = vsel %vm436_vm11, %v1943_v35, %v1945_v36  ;;  %1098 = vperm.xlu2 %1570, %v1077_v56  }
  0xff   : > { %v749_v58 = vsel %vm697_vm0, %v725_v57, %v673_v13  ;;  %v452_v62 = vperm.slane %v2185_v21, 0  ;;  %v482_v0 = vsel %vm438_vm12, %v480_v31, %v481_v19  ;;  %v2202_v1 = vadd.s32 4294967294, %v1931_v28 }
 0x100   : > { %959 = vmatpush.msrb.mxu3 %v749_v58  ;;  %v2204_v30 = vrot.slane %v482_v0, 2  ;;  %v559_v9 = vsel %vm424_vm7, %v1914_v15, %v1955_v39  ;;  %v560_v26 = vsel %vm436_vm11, %v1957_v40, %v1963_v42  ;;  %v2213_v35 = vadd.s32 4294967295, %v1931_v28 }
 0x101   : > { %vm464_vm1 = vcmp.eq.s32.totalorder %v1900_v33, %v452_v62  ;;  %v531_v36 = vperm.slane %v2202_v1, 0  ;;  %v561_v2 = vsel %vm438_vm12, %v559_v9, %v560_v26  ;;  %v638_v44 = vsel %vm424_vm7, %v1917_v16, %v1976_v46  ;;  %1479 = vmatmul.msk.f32.vlgmr.msrb.gmra.mxu3 %vm797_vm5, %v2142_v27 }
 0x102   : > { %v492_v15 = vperm.slane %v2204_v30, 0  ;;  %v2224_v39 = vrot.slane %v561_v2, 2  ;;  %v610_v40 = vperm.slane %v2213_v35, 0  ;;  %v639_v42 = vsel %vm436_vm11, %v1987_v51, %v1989_v52 }
 0x103   : > { %vm543_vm2 = vcmp.eq.s32.totalorder %v1900_v33, %v531_v36  ;;  %v640_v3 = vsel %vm438_vm12, %v638_v44, %v639_v42  ;;  %v686_v16 = vperm.slane %v1931_v28, 0  ;;  %v714_v46 = vsel %vm424_vm7, %v1934_v29, %v2005_v59 }
 0x104   : > { %v516_v37 = vsel %vm464_vm1, %v492_v15, 0.0  ;;  %v571_v4 = vperm.slane %v2224_v39, 0  ;;  %vm622_vm3 = vcmp.eq.s32.totalorder %v1900_v33, %v610_v40  ;;  %v2238_v50 = vrot.slane %v640_v3, 2 }
 0x105   : > { %vm2241_vm4 = vcmp.eq.s32.totalorder %v1900_v33, %v686_v16  ;;  %v715_v52 = vsel %vm436_vm11, %v2007_v60, %v2009_v61  ;;  %v453_v27 = vperm.slane %v2185_v21, 1  ;;  %v493_v29 = vperm.slane %v2204_v30, 1 }
 0x106   : > { %v595_v59 = vsel %vm543_vm2, %v571_v4, %v516_v37  ;;  %v650_v63 = vperm.slane %v2238_v50, 0  ;;  %v716_v6 = vsel %vm438_vm12, %v714_v46, %v715_v52  ;;  %v532_v7 = vperm.slane %v2202_v1, 1  ;;  %1062 = vperm.xlu2 %1570, %v1049_v8  }
 0x107   : > { %v717_v12 = vrot.slane %v716_v6, 2  ;;  %vm465_vm14 = vcmp.eq.s32.totalorder %v1900_v33, %v453_v27  ;;  %v572_v60 = vperm.slane %v2224_v39, 1  ;;  %v611_v61 = vperm.slane %v2213_v35, 1 }
 0x108   : > { %v674_v17 = vsel %vm622_vm3, %v650_v63, %v595_v59  ;;  %v517_v18 = vsel %vm465_vm14, %v493_v29, 0.0  ;;  %vm544_vm15 = vcmp.eq.s32.totalorder %v1900_v33, %v532_v7  ;;  %v651_v20 = vperm.slane %v2238_v50, 1 }
 0x109   : > { %v726_v22 = vperm.slane %v717_v12, 0  ;;  %v596_v23 = vsel %vm544_vm15, %v572_v60, %v517_v18  ;;  %vm623_vm0 = vcmp.eq.s32.totalorder %v1900_v33, %v611_v61  ;;  %v687_v24 = vperm.slane %v1931_v28, 1 }
 0x10a   : > { %v675_v25 = vsel %vm623_vm0, %v651_v20, %v596_v23  ;;  %v727_v34 = vperm.slane %v717_v12, 1  ;;  %v454_v38 = vperm.slane %v2185_v21, 2  ;;  %v494_v32 = vperm.slane %v2204_v30, 2 }
 0x10b   : > { %v750_v45 = vsel %vm2241_vm4, %v726_v22, %v674_v17  ;;  %vm699_vm1 = vcmp.eq.s32.totalorder %v1900_v33, %v687_v24  ;;  %v533_v47 = vperm.slane %v2202_v1, 2  ;;  %v573_v48 = vperm.slane %v2224_v39, 2 }
 0x10c   : > { %982 = vmatpush.msra.mxu0 %v750_v45  ;;  %v751_v49 = vsel %vm699_vm1, %v727_v34, %v675_v25  ;;  %vm466_vm2 = vcmp.eq.s32.totalorder %v1900_v33, %v454_v38  ;;  %v612_v53 = vperm.slane %v2213_v35, 2  ;;  %v652_v43 = vperm.slane %v2238_v50, 2 }
 0x10d   : > { %1002 = vmatpush.msra.mxu1 %v751_v49  ;;  %v518_v54 = vsel %vm466_vm2, %v494_v32, 0.0  ;;  %vm545_vm3 = vcmp.eq.s32.totalorder %v1900_v33, %v533_v47  ;;  %v688_v14 = vperm.slane %v1931_v28, 2  ;;  %v728_v5 = vperm.slane %v717_v12, 2  ;;  %1480 = vmatmul.msk.f32.vlgmr.msra.gmra.mxu0 %vm797_vm5, %v796_v41 }
 0x10e   : > { %v597_v55 = vsel %vm545_vm3, %v573_v48, %v518_v54  ;;  %vm624_vm4 = vcmp.eq.s32.totalorder %v1900_v33, %v612_v53  ;;  %v455_v57 = vperm.slane %v2185_v21, 3  ;;  %v495_v13 = vperm.slane %v2204_v30, 3  ;;  %1481 = vmatmul.msk.f32.vlgmr.msra.gmra.mxu1 %vm797_vm5, %v796_v41 }
 0x10f   : > { %v676_v31 = vsel %vm624_vm4, %v652_v43, %v597_v55  ;;  %vm700_vm14 = vcmp.eq.s32.totalorder %v1900_v33, %v688_v14  ;;  %v534_v19 = vperm.slane %v2202_v1, 3  ;;  %v574_v56 = vperm.slane %v2224_v39, 3 }
 0x110   : > { %v1471_v58 = vmul.f32 -1.442695, %v1886_v11  ;;  %v752_v62 = vsel %vm700_vm14, %v728_v5, %v676_v31  ;;  %vm467_vm15 = vcmp.eq.s32.totalorder %v1900_v33, %v455_v57  ;;  %v613_v0 = vperm.slane %v2213_v35, 3 }
 0x111   : > { %1022 = vmatpush.msra.mxu2 %v752_v62  ;;  %v519_v21 = vsel %vm467_vm15, %v495_v13, 0.0  ;;  %vm546_vm0 = vcmp.eq.s32.totalorder %v1900_v33, %v534_v19  ;;  %v653_v30 = vperm.slane %v2238_v50, 3  ;;  %v689_v9 = vperm.slane %v1931_v28, 3 }
 0x112   : > { %v598_v26 = vsel %vm546_vm0, %v574_v56, %v519_v21  ;;  %vm625_vm1 = vcmp.eq.s32.totalorder %v1900_v33, %v613_v0  ;;  %v729_v1 = vperm.slane %v717_v12, 3  ;;  %1482 = vmatmul.msk.f32.vlgmr.msra.gmra.mxu2 %vm797_vm5, %v796_v41  ;;  %v1470_v35 = vmul.f32 -1.442695, %v1884_v10 }
 0x113   : > { %v677_v36 = vsel %vm625_vm1, %v653_v30, %v598_v26  ;;  %vm701_vm2 = vcmp.eq.s32.totalorder %v1900_v33, %v689_v9  ;;  %1572 = vpow2.f32 %v1471_v58 }
 0x114   : > { %v753_v2 = vsel %vm701_vm2, %v729_v1, %v677_v36  ;;  %1574 = vpow2.f32 %v1470_v35 }
 0x115   : > { %1042 = vmatpush.msra.mxu3 %v753_v2 }
 0x116   : > { %1483 = vmatmul.msk.f32.vlgmr.msra.gmra.mxu3 %vm797_vm5, %v796_v41 }
 0x119   : > { %v1573_v44 = vpop.eup %1572 }
 0x11a   : > { %v761_v15 = vadd.f32 1.0, %v1573_v44  ;;  %v1575_v28 = vpop.eup %1574 }
 0x11b   : > { %v760_v39 = vadd.f32 1.0, %v1575_v28 }
 0x11c   : > { %1576 = vrcp.f32 %v761_v15  ;;  %vm782_vm3 = vweird.f32 %v761_v15  ;;  %v788_v4 = vand.u32 2147483648, %v761_v15  ;;  %v786_v52 = vand.u32 2147483647, %v761_v15 }
 0x11d   : > { %1578 = vrcp.f32 %v760_v39  ;;  %vm767_vm14 = vweird.f32 %v760_v39  ;;  %v773_v27 = vand.u32 2147483648, %v760_v39  ;;  %v771_v63 = vand.u32 2147483647, %v760_v39 }
 0x11e   : > { %v789_v29 = vor.u32 1.1754944e-38, %v788_v4  ;;  %vm787_vm0 = vcmp.eq.f32.partialorder %v786_v52, 8.507059e+37 }
 0x11f   : > { %v774_v7 = vor.u32 1.1754944e-38, %v773_v27  ;;  %vm772_vm2 = vcmp.eq.f32.partialorder %v771_v63, 8.507059e+37 }
 0x122   : > { %v1577_v40 = vpop.eup %1576 }
 0x123   : > { %v778_v42 = vmul.f32 %v1577_v40, %v761_v15  ;;  %v1579_v3 = vpop.eup %1578  ;;  %vm783_vm4 = vweird.f32 %v1577_v40 }
 0x124   : > { %v763_v16 = vmul.f32 %v1579_v3, %v760_v39  ;;  %vm784_vm5 = vmor %vm782_vm3, %vm783_vm4  ;;  %vm768_vm15 = vweird.f32 %v1579_v3 }
 0x125   : > { %v779_v46 = vsub.f32 1.0, %v778_v42  ;;  %vm769_vm1 = vmor %vm767_vm14, %vm768_vm15 }
 0x126   : > { %v764_v33 = vsub.f32 1.0, %v763_v16 }
 0x127   : > { %v780_v37 = vmul.f32 %v1577_v40, %v779_v46 }
 0x128   : > { %v765_v50 = vmul.f32 %v1579_v3, %v764_v33 }
 0x129   : > { %v781_v51 = vadd.f32 %v1577_v40, %v780_v37 }
 0x12a   : > { %v766_v59 = vadd.f32 %v1579_v3, %v765_v50 }
 0x12b   : > { %v785_v6 = vsel %vm784_vm5, %v1577_v40, %v781_v51 }
 0x12c   : > { %v790_v8 = vsel %vm787_vm0, %v789_v29, %v785_v6  ;;  %v770_v12 = vsel %vm769_vm1, %v1579_v3, %v766_v59 }
 0x12d   : > { %v793_v60 = vmul.f32 %v790_v8, %v1886_v11  ;;  %v775_v61 = vsel %vm772_vm2, %v774_v7, %v770_v12 }
 0x12e   : > { %v792_v17 = vmul.f32 %v775_v61, %v1884_v10 }
 0x12f   : > { %v1083_v18 = vrot.slane %v793_v60, 6  ;;  %v1084_v20 = vrot.slane %v793_v60, 1 }
 0x130   : > { %v1082_v22 = vrot.slane %v792_v17, 3 }
 0x131   : > { %v1086_v23 = vsel %vm424_vm7, %v1083_v18, %v1084_v20  ;;  %v1089_v38 = vsel %vm430_vm9, %v1083_v18, %v1084_v20  ;;  %v1093_v30 = vsel %vm436_vm11, %v1083_v18, %v1084_v20 }
 0x132   : > { %v1085_v24 = vsel %vm422_vm6, %v792_v17, %v1082_v22  ;;  %v1088_v34 = vsel %vm428_vm8, %v792_v17, %v1082_v22  ;;  %v1092_v58 = vsel %vm424_vm7, %v792_v17, %v1082_v22  ;;  %vm1181_vm6 = vcmask 1045508  }
 0x133   : > { %v1087_v25 = vsel %vm426_vm13, %v1085_v24, %v1086_v23  ;;  %v1090_v32 = vsel %vm432_vm10, %v1088_v34, %v1089_v38  ;;  %vm1183_vm8 = vcmask 1043456   ;;  %v1094_v1 = vsel %vm438_vm12, %v1092_v58, %v1093_v30 }
 0x134   : > { %v1112_v11 = vperm.slane %v1087_v25, 1  ;;  %v1113_v45 = vperm.slane %v1087_v25, 2  ;;  %v1111_v48 = vperm.slane %v1087_v25, 0  ;;  %v1114_v53 = vperm.slane %v1087_v25, 3 }
 0x135   : > { %v2307_v5 = vrot.slane %v1090_v32, 1  ;;  %v1095_v24 = vrot.slane %v1094_v1, 2 }
 0x137   : > { %v1115_v26 = vperm.slane %v2307_v5, 0  ;;  %v1116_v39 = vperm.slane %v2307_v5, 1  ;;  %v1117_v20 = vperm.slane %v2307_v5, 2  ;;  %v1118_v22 = vperm.slane %v2307_v5, 3 }
 0x149   : > { %v2305_v41 = vpop.permute.xlu2 %1057 }
 0x158   : > { %v1099_v47 = vpop.permute.xlu2 %1098 }
 0x159   : > { %v1136_v54 = vmul.f32 %v1112_v11, %v1099_v47  ;;  %v1137_v57 = vmul.f32 %v1113_v45, %v1099_v47  ;;  %v1135_v31 = vmul.f32 %v1111_v48, %v1099_v47  ;;  %v1138_v56 = vmul.f32 %v1114_v53, %v1099_v47 }
 0x15a   : > { %v1119_v48 = vperm.slane %v1095_v24, 0 }
 0x15e   : > { %v1053_v10 = vpop.permute.xlu1 %1052 }
 0x162   : > { %v1109_v5 = vpop.permute.xlu0 %1108 }
 0x166   : > { %v838_v49 = vpop.f32.mrf.mxu1  ;;  %v818_v14 = vpop.f32.mrf.mxu0 }
 0x167   : > { %v1066_v43 = vmul.f32 %v1053_v10, %v838_v49  ;;  %v1171_v55 = vrot.slane %v838_v49, 6  ;;  %v1065_v13 = vmul.f32 %v1053_v10, %v818_v14 }
 0x169   : > { %v1148_v62 = vadd.f32 %v1136_v54, %v1066_v43  ;;  %v1180_v36 = vsel %vm426_vm13, %v818_v14, %v1171_v55  ;;  %v1147_v15 = vadd.f32 %v1135_v31, %v1065_v13  ;;  %v1120_v55 = vperm.slane %v1095_v24, 1 }
 0x16b   : > { %v1209_v40 = vrot.slane %v1148_v62, 6  ;;  %v1233_v8 = vsel %vm426_vm13, %v1147_v15, 0.0  ;;  %v1238_v60 = vsel %vm426_vm13, %v1148_v62, 0.0 }
 0x16c   : > { %v1104_v28 = vpop.permute.xlu1 %1103 }
 0x16d   : > { %v858_v19 = vpop.f32.mrf.mxu2  ;;  %v1139_v37 = vmul.f32 %v1115_v26, %v1104_v28  ;;  %v1140_v4 = vmul.f32 %v1116_v39, %v1104_v28  ;;  %v1218_v51 = vsel %vm426_vm13, %v1147_v15, %v1209_v40  ;;  %v1141_v25 = vmul.f32 %v1117_v20, %v1104_v28 }
 0x16e   : > { %v1067_v0 = vmul.f32 %v1053_v10, %v858_v19  ;;  %v1172_v21 = vrot.slane %v858_v19, 4  ;;  %v1142_v45 = vmul.f32 %v1118_v22, %v1104_v28 }
 0x16f   : > { %v878_v9 = vpop.f32.mrf.mxu3 }
 0x170   : > { %v1149_v2 = vadd.f32 %v1137_v57, %v1067_v0  ;;  %v1068_v35 = vmul.f32 %v1053_v10, %v878_v9  ;;  %v1173_v44 = vrot.slane %v878_v9, 2  ;;  %v1144_v9 = vmul.f32 %v1120_v55, %v1109_v5 }
 0x172   : > { %v1210_v42 = vrot.slane %v1149_v2, 4  ;;  %v1150_v3 = vadd.f32 %v1138_v56, %v1068_v35  ;;  %v1182_v16 = vsel %vm1181_vm6, %v1172_v21, %v1173_v44  ;;  %v1243_v10 = vsel %vm426_vm13, %v1149_v2, 0.0 }
 0x173   : > { %v1184_v46 = vsel %vm1183_vm8, %v1180_v36, %v1182_v16  ;;  %v1143_v21 = vmul.f32 %v1119_v48, %v1109_v5 }
 0x174   : > { %1194 = vst [vmem:[%s2320_s17] sm:$0xff] %v1184_v46  ;;  %v1211_v33 = vrot.slane %v1150_v3, 2  ;;  %v1248_v58 = vsel %vm426_vm13, %v1150_v3, 0.0 }
 0x175   : > { %v901_v50 = vpop.f32.mrf.mxu0 }
 0x176   : > { %v1219_v52 = vsel %vm1181_vm6, %v1210_v42, %v1211_v33  ;;  %v1069_v27 = vmul.f32 %v2305_v41, %v901_v50  ;;  %v921_v29 = vpop.f32.mrf.mxu1  ;;  %v1121_v42 = vperm.slane %v1095_v24, 2 }
 0x177   : > { %v1220_v59 = vsel %vm1183_vm8, %v1218_v51, %v1219_v52  ;;  %v1070_v63 = vmul.f32 %v2305_v41, %v921_v29  ;;  %v1174_v34 = vrot.slane %v921_v29, 6 }
 0x178   : > { %1230 = vst [vmem:[%s2330_s11] sm:$0xff] %v1220_v59  ;;  %v1151_v6 = vadd.f32 %v1139_v37, %v1069_v27  ;;  %v1122_v37 = vperm.slane %v1095_v24, 3 }
 0x179   : > { %v1152_v7 = vadd.f32 %v1140_v4, %v1070_v63  ;;  %v1185_v49 = vsel %vm426_vm13, %v901_v50, %v1174_v34  ;;  %v1145_v4 = vmul.f32 %v1121_v42, %v1109_v5 }
 0x17a   : > { %v1234_v12 = vsel %vm426_vm13, %v1151_v6, 0.0  ;;  %v1146_v29 = vmul.f32 %v1122_v37, %v1109_v5 }
 0x17b   : > { %v1235_v61 = vadd.f32 %v1234_v12, %v1233_v8  ;;  %v1239_v17 = vsel %vm426_vm13, %v1152_v7, 0.0  ;;  %v1212_v57 = vrot.slane %v1152_v7, 6 }
 0x17c   : > { %v1240_v18 = vadd.f32 %v1239_v17, %v1238_v60 }
 0x17d   : > { %v1221_v1 = vsel %vm426_vm13, %v1151_v6, %v1212_v57 }
 0x180   : > { %v941_v23 = vpop.f32.mrf.mxu2 }
 0x181   : > { %v1071_v38 = vmul.f32 %v2305_v41, %v941_v23  ;;  %v1175_v11 = vrot.slane %v941_v23, 4 }
 0x183   : > { %v1153_v32 = vadd.f32 %v1141_v25, %v1071_v38 }
 0x184   : > { %v961_v47 = vpop.f32.mrf.mxu3 }
 0x185   : > { %v1244_v53 = vsel %vm426_vm13, %v1153_v32, 0.0  ;;  %v1072_v43 = vmul.f32 %v2305_v41, %v961_v47  ;;  %v1176_v54 = vrot.slane %v961_v47, 2  ;;  %v1213_v13 = vrot.slane %v1153_v32, 4  ;;  %v1063_v41 = vpop.permute.xlu2 %1062 }
 0x186   : > { %v1245_v14 = vadd.f32 %v1244_v53, %v1243_v10 }
 0x187   : > { %v1154_v31 = vadd.f32 %v1142_v45, %v1072_v43  ;;  %v1186_v19 = vsel %vm1181_vm6, %v1175_v11, %v1176_v54 }
 0x188   : > { %v1187_v56 = vsel %vm1183_vm8, %v1185_v49, %v1186_v19 }
 0x189   : > { %1195 = vst [vmem:[%s2320_s17 + $0x8] sm:$0xff] %v1187_v56  ;;  %v1214_v62 = vrot.slane %v1154_v31, 2  ;;  %v1249_v0 = vsel %vm426_vm13, %v1154_v31, 0.0 }
 0x18a   : > { %v1250_v30 = vadd.f32 %v1249_v0, %v1248_v58  ;;  %v984_v26 = vpop.f32.mrf.mxu0 }
 0x18b   : > { %v1222_v36 = vsel %vm1181_vm6, %v1213_v13, %v1214_v62  ;;  %v1073_v2 = vmul.f32 %v1063_v41, %v984_v26  ;;  %v1004_v35 = vpop.f32.mrf.mxu1 }
 0x18c   : > { %v1223_v44 = vsel %vm1183_vm8, %v1221_v1, %v1222_v36  ;;  %v1074_v15 = vmul.f32 %v1063_v41, %v1004_v35  ;;  %v1177_v52 = vrot.slane %v1004_v35, 6 }
 0x18d   : > { %1231 = vst [vmem:[%s2330_s11 + $0x8] sm:$0xff] %v1223_v44  ;;  %v1155_v28 = vadd.f32 %v1143_v21, %v1073_v2 }
 0x18e   : > { %v1156_v39 = vadd.f32 %v1144_v9, %v1074_v15  ;;  %v1188_v7 = vsel %vm426_vm13, %v984_v26, %v1177_v52 }
 0x18f   : > { %v1236_v40 = vsel %vm426_vm13, %v1155_v28, 0.0 }
 0x190   : > { %v1237_v3 = vadd.f32 %v1236_v40, %v1235_v61  ;;  %v1241_v16 = vsel %vm426_vm13, %v1156_v39, 0.0  ;;  %v1215_v17 = vrot.slane %v1156_v39, 6 }
 0x191   : > { %v1242_v46 = vadd.f32 %v1241_v16, %v1240_v18 }
 0x192   : > { %v1224_v32 = vsel %vm426_vm13, %v1155_v28, %v1215_v17 }
 0x193   : > { %v1257_v33 = vrot.slane %v1242_v46, 6 }
 0x195   : > { %v1024_v50 = vpop.f32.mrf.mxu2  ;;  %v2359_v51 = vsel %vm426_vm13, %v1237_v3, %v1257_v33 }
 0x196   : > { %v1075_v27 = vmul.f32 %v1063_v41, %v1024_v50  ;;  %v1178_v63 = vrot.slane %v1024_v50, 4 }
 0x198   : > { %v1157_v59 = vadd.f32 %v1145_v4, %v1075_v27 }
 0x199   : > { %v1044_v6 = vpop.f32.mrf.mxu3 }
 0x19a   : > { %v1246_v8 = vsel %vm426_vm13, %v1157_v59, 0.0  ;;  %v1076_v12 = vmul.f32 %v1063_v41, %v1044_v6  ;;  %v1179_v60 = vrot.slane %v1044_v6, 2  ;;  %v1216_v18 = vrot.slane %v1157_v59, 4 }
 0x19b   : > { %v1247_v61 = vadd.f32 %v1246_v8, %v1245_v14 }
 0x19c   : > { %v1158_v20 = vadd.f32 %v1146_v29, %v1076_v12  ;;  %v1189_v22 = vsel %vm1181_vm6, %v1178_v63, %v1179_v60 }
 0x19d   : > { %v1190_v23 = vsel %vm1183_vm8, %v1188_v7, %v1189_v22  ;;  %v1258_v34 = vrot.slane %v1247_v61, 4 }
 0x19e   : > { %1196 = vst [vmem:[%s2320_s17 + $0x10] sm:$0xff] %v1190_v23  ;;  %v1217_v24 = vrot.slane %v1158_v20, 2  ;;  %v1251_v25 = vsel %vm426_vm13, %v1158_v20, 0.0  ;;  %s2405_s17 = scalar_lea.sflag [#allocation7], %s1270_s12 }
 0x19f   : > { %v1252_v38 = vadd.f32 %v1251_v25, %v1250_v30 }
 0x1a0   : > { %v1225_v11 = vsel %vm1181_vm6, %v1216_v18, %v1217_v24 }
 0x1a1   : > { %v1226_v10 = vsel %vm1183_vm8, %v1224_v32, %v1225_v11  ;;  %v1259_v45 = vrot.slane %v1252_v38, 2 }
 0x1a2   : > { %1232 = vst [vmem:[%s2330_s11 + $0x10] sm:$0xff] %v1226_v10 }
 0x1a3   : > { %1637 = shalt.err (!%p1634_p4)
}
 0x1a4   : > { %s1743_s11 = smov 128   ;;  %s2513_s12 = sld [smem:[#allocation13_spill]]  ;;  %v1261_v47 = vsel %vm1181_vm6, %v1258_v34, %v1259_v45 }
 0x1a5   : > { %s1744_s18 = smov 512   ;;  %s1745_s1 = smov 8   ;;  %v1262_v48 = vsel %vm1183_vm8, %v2359_v51, %v1261_v47 }
 0x1a6   : > { %1505 = dma.vmem_to_hbm [thread:$0]  (%p1837_p10), %s2367_s19, 384, %s1306_s23, %s2405_s17, %s1743_s11, %s1744_s18, %s1745_s1  }
 0x1a7   : > { %s1658_s10 = scalar_lea.hbm %s2485_s7, 96 }
 0x1aa   : > { %s2514_s28 = int_to_ptr.hbm [resolvable:$true] %s2513_s12 }
 0x1ab   : > { %s1652_s22 = sshra.s32 %s2514_s28, 4  ;;  %s1653_s22 = int_to_ptr.hbm [resolvable:$true] %s1652_s22 }
 0x1ac   : > { %s1654_s0 = scalar_lea.hbm %s1653_s22, 24  ;;  %p1659_p9 = scmp.lt.s32.totalorder %s1653_s22, %s2485_s7 }
 0x1ad   : > { %p1655_p5 = scmp.ne.s32.totalorder %s1653_s22, %s1654_s0  ;;  %p1660_p1 = scmp.lt.s32.totalorder %s1658_s10, %s1654_s0 }
 0x1af   : > { %p1656_p7 = pnand %p1655_p5, %p1837_p10  ;;  %p1661_p6 = por %p1660_p1, %p1659_p9 }
 0x1b1   : > { %p1657_p8 = pneg %p1656_p7 }
 0x1b3   : > { %p1662_p12 = pnand %p1661_p6, %p1657_p8 }
 0x1b5   : > { %1665 = shalt.err (!%p1662_p12)
}
 0x1b6   : > { %s2515_s19 = smov %s2514_s28  ;;  %s2516_s23 = sld [smem:[#allocation14_spill]]  ;;  %1264 = vst [vmem:[%s2392_s21] sm:$0xff] %v1262_v48 }
 0x1b7   : > { %1506 = dma.vmem_to_hbm [thread:$0]  (%p1837_p10), %s2370_s29, 384, %s2515_s19, %s2405_s17, %s1743_s11, %s1744_s18, %s1745_s1  }
 0x1b8   : > { %s1266_s28 = scalar_lea.sflag [#allocation4], %s1873_s15  ;;  %s1686_s12 = scalar_lea.hbm %s2483_s5, 32 }
 0x1bc   : > { %s2517_s9 = int_to_ptr.hbm [resolvable:$true] %s2516_s23 }
 0x1bd   : > { %s1680_s2 = sshra.s32 %s2517_s9, 4  ;;  %s1681_s2 = int_to_ptr.hbm [resolvable:$true] %s1680_s2 }
 0x1be   : > { %s1682_s22 = scalar_lea.hbm %s1681_s2, 8  ;;  %p1687_p3 = scmp.lt.s32.totalorder %s1681_s2, %s2483_s5 }
 0x1bf   : > { %p1683_p13 = scmp.ne.s32.totalorder %s1681_s2, %s1682_s22  ;;  %p1688_p4 = scmp.lt.s32.totalorder %s1686_s12, %s1682_s22 }
 0x1c1   : > { %p1684_p0 = pnand %p1683_p13, %p1837_p10  ;;  %p1689_p5 = por %p1688_p4, %p1687_p3 }
 0x1c3   : > { %p1685_p2 = pneg %p1684_p0 }
 0x1c5   : > { %p1690_p7 = pnand %p1689_p5, %p1685_p2 }
 0x1c7   : > { %1693 = shalt.err (!%p1690_p7)
}
 0x1c8   : > { %s2518_s1 = smov %s2517_s9 }
 0x1c9   : > { %1504 = dma.vmem_to_hbm [thread:$0]  (%p1837_p10), %s2402_s8, 128, %s2518_s1, %s1266_s28  }
 0x1ca PF: > { %p1525_p8 = scmp.ge.s32.totalorder %s1736_s27, 2  ;;  %s1337_s15 = sand.u32 1, %s1724_s24  }
 0x1cb   : > { %s1338_s29 = scalar_lea.sflag [#allocation4], %s1337_s15 }
 0x1cc   : > { %p1515_p9 = pnand %p1525_p8, %p1841_p11 }
 0x1ce   : > { %p1516_p1 = pneg %p1515_p9 }
 0x1d0   : > { %1715 = dma.done.wait (%p1516_p1), %s1338_s29, 128  }
 0x1d1   : > { %1717 = vsyncadd (%p1516_p1), %s1338_s29, 4294967168  ;;  %s2519_s21 = sadd.s32 4294967294, %s1736_s27  }
 0x1d2   : > { %s1347_s18 = sand.u32 1, %s2519_s21  }
 0x1d3   : > { %s1348_s13 = scalar_lea.sflag [#allocation7], %s1347_s18 }
 0x1d4   : > { %1719 = dma.done.wait (%p1516_p1), %s1348_s13, 768  }
 0x1d5   : > { %1721 = vsyncadd (%p1516_p1), %s1348_s13, 4294966528  ;;  %s2520_s8 = sld [smem:[#allocation12_spill]]  ;;  %p24_p10 = scmp.ge.s32.totalorder %s1811_s30, 6  }
 0x1d6   : > { %s2521_s24 = smov %s1728_s25  ;;  %s2522_s25 = smov %s1732_s26 }
 0x1d7   : > { %s2524_s27 = smov %s1811_s30  ;;  %26 = sbr.rel (!%p24_p10) target bundleno = 11 (0xb), region = 117 }
 0x1db   : > { %s2523_s26 = smov %s2520_s8 }
 0x1dc   :  { %1364 = vsyncpa [#allocation3], 1 }
 0x1dd   :  { %1366 = vsyncpa [#allocation3 + $0x1], 1 }
 0x1de   :  { %1367 = vsyncpa [#allocation4], 1 }
 0x1df   :  { %1369 = vsyncpa [#allocation4 + $0x1], 1 }
 0x1e0   :  { %1370 = vsyncpa [#allocation7], 1 }
 0x1e1   :  { %1372 = vsyncpa [#allocation7 + $0x1], 1 }

</bundles_post_ra>
